<compile_context>
chip_gen: v6e
topology: v6e:2x2x1
jax: 0.10.0
libtpu: 0.0.40
codegen_flags: <defaults>
</compile_context>

<pallas_src>
import functools
import math

import jax
import jax.numpy as jnp
from jax.experimental import pallas as pl
from jax.experimental.pallas import tpu as pltpu


# --------------------------------------------------------------------------- helpers
def _round_up(x, m):
    return (x + m - 1) // m * m


def _pick_tile(n, target, align):
    """Largest multiple of `align` that is <= target and divides n; else n (full)."""
    if n <= target:
        return n
    t = (target // align) * align
    while t >= align:
        if n % t == 0:
            return t
        t -= align
    return n


def _sublane(itemsize):
    return {4: 8, 2: 16, 1: 32}.get(itemsize, 8)


def _vmem_budget():
    """~75% of the physical per-core VMEM (headroom for Mosaic internal scratch).

    v5e/v6e: 128 MiB -> ~96 MiB budget; v7x: 64 MiB -> ~48 MiB budget.
    """
    cap = None
    try:
        info = pltpu.get_tpu_info()
        for name in ("vmem_capacity_bytes", "vmem_size_bytes", "vmem_bytes"):
            v = getattr(info, name, None)
            if v:
                cap = int(v)
                break
    except Exception:
        cap = None
    if not cap or cap <= 0:
        cap = 64 << 20  # conservative default == v7x physical VMEM per TensorCore
    return int(cap) * 3 // 4


def _qkv_tiles(Mp, H, N, itemsize, sub, budget):
    """Pick (tm, tn, tkh) so the double-buffered working set fits the budget.

    Priority: large row tile (the weight slab is re-read Mp/tm times), then
    large contraction tile.  The contraction axis only splits for large H on
    small-VMEM parts (v7x)."""
    tn = _pick_tile(N, 512, 128)

    def ws(tm_, tkh_):
        return ((tm_ * tkh_ + tkh_ * tn + tn + tm_ * tn) * itemsize * 2  # pipelined x, w, b, out
                + tm_ * tn * 4                                           # f32 accumulator scratch
                + (4 << 20))                                             # headroom

    tm = tkh = None
    for mt in (2048, 1024, 512, 256, 128, 64, 32, 16, 8):
        tm = _pick_tile(Mp, mt, sub)
        for kt in (1 << 30, 4096, 2048, 1024, 512, 256, 128):
            tkh = H if kt >= H else _pick_tile(H, kt, 128)
            if ws(tm, tkh) <= budget:
                return tm, tn, tkh
    return tm, tn, tkh


def _attn_tiles(S, hd, itemsize, sub, budget):
    """Pick (tq, tk): kv tile 128-lane aligned (MXU/VPU packing); q tile as large
    as VMEM allows (K/V HBM traffic per head scales as S^2*hd/tq)."""
    def ws(tq_, tk_):
        return ((2 * tq_ * hd + 2 * tk_ * hd) * itemsize * 2  # q/out + k/v blocks, double-buffered
                + (2 * tq_ + tq_ * hd) * 4                     # m, l, acc f32 scratch
                + 2 * tq_ * tk_ * 4                            # s, p f32 score temporaries
                + (4 << 20))                                   # headroom

    tk = _pick_tile(S, 512, 128)
    tq = _pick_tile(S, 8, sub)
    for qt in (1024, 512, 256, 128, 64, 32, 16, 8):
        tq = _pick_tile(S, qt, sub)
        if ws(tq, tk) <= budget:
            return tq, tk
    for kt in (256, 128):
        tk = _pick_tile(S, kt, 128)
        if ws(tq, tk) <= budget:
            return tq, tk
    return tq, tk


# --------------------------------------------------------------------------- kernels
def _qkv_proj_kernel(x_ref, w_ref, b_ref, o_ref, acc_ref):
    """One (tm, tn) tile of x @ W_packed + b_packed, accumulated over the
    contraction grid axis in an f32 VMEM scratch."""
    kh = pl.program_id(2)

    @pl.when(kh == 0)
    def _():
        acc_ref[...] = jnp.zeros(acc_ref.shape, dtype=acc_ref.dtype)

    acc_ref[...] += jnp.dot(x_ref[...], w_ref[...],
                            preferred_element_type=jnp.float32)

    @pl.when(kh == pl.num_programs(2) - 1)
    def _():
        o_ref[...] = (acc_ref[...] + b_ref[...].astype(jnp.float32)).astype(o_ref.dtype)


def _flash_attn_kernel(q_ref, k_ref, v_ref, o_ref, m_sc, l_sc, acc_sc, *, scale):
    """Online-softmax flash attention; grid = (batch, head, q tile, kv tile)."""
    ki = pl.program_id(3)

    @pl.when(ki == 0)
    def _():
        m_sc[...] = jnp.full(m_sc.shape, -jnp.inf, dtype=m_sc.dtype)
        l_sc[...] = jnp.zeros(l_sc.shape, dtype=l_sc.dtype)
        acc_sc[...] = jnp.zeros(acc_sc.shape, dtype=acc_sc.dtype)

    # Fold softmax scale into Q: tq*hd multiplies instead of tq*tk.
    q = q_ref[...] * scale
    # scores: (tq, hd) x (tk, hd)^T -> (tq, tk), f32 MXU accumulate.
    # TODO(synk): optional bf16 cast of Q/K for the MXU on v6e/v7x (precision tradeoff).
    s = jax.lax.dot_general(q, k_ref[...], (((1,), (1,)), ((), ())),
                            preferred_element_type=jnp.float32)

    m_prev = m_sc[...]                                         # (tq, 1)
    m_new = jnp.maximum(m_prev, jnp.max(s, axis=-1, keepdims=True))
    alpha = jnp.exp(m_prev - m_new)                            # (tq, 1)
    p = jnp.exp(s - m_new)                                     # (tq, tk)

    l_sc[...] = alpha * l_sc[...] + jnp.sum(p, axis=-1, keepdims=True)
    acc_sc[...] = alpha * acc_sc[...] + jnp.dot(
        p.astype(v_ref.dtype), v_ref[...], preferred_element_type=jnp.float32)
    m_sc[...] = m_new

    @pl.when(ki == pl.num_programs(3) - 1)
    def _():
        inv_l = pl.reciprocal(l_sc[...], approx=True)          # EUP, not VALU divide
        o_ref[...] = (acc_sc[...] * inv_l).astype(o_ref.dtype)


# --------------------------------------------------------------------------- wrapper
def pack_qkv_params(wq, bq, wk, bk, wv, bv):
    """PyTorch-style (out, in) Linear params -> matmul-ready packed layout.
    Do this ONCE at parameter-setup time (no per-forward transpose/concat)."""
    w_qkv = jnp.concatenate([wq.T, wk.T, wv.T], axis=1)       # (H, 3H)
    b_qkv = jnp.concatenate([bq, bk, bv]).reshape(1, -1)      # (1, 3H)
    return w_qkv, b_qkv


def perfformer_self_attention(hidden_states, w_qkv, b_qkv, num_heads,
                              attention_mask=None):
    """Vanilla (no-mask) PerfformerSelfAttention forward -> (B, S, all_head_size)."""
    # TODO(synk): additive attention_mask path not implemented (None-mask path only).
    if attention_mask is not None:
        raise NotImplementedError("attention_mask is not supported by this kernel")
    # TODO(synk): RoPE ('rope' position_embedding_type) not implemented; default
    #             config uses 'absolute-learnable' which needs no in-kernel rotation.
    # TODO(synk): attention-probs dropout is identity here (eval mode).

    B, S, H = hidden_states.shape
    nh = num_heads
    assert H % nh == 0
    hd = H // nh
    dtype = hidden_states.dtype
    itemsize = jnp.dtype(dtype).itemsize
    sub = _sublane(itemsize)
    budget = _vmem_budget()

    # ---------------- stage 1: fused QKV projection -> (Mp, 3H) ----------------
    M = B * S
    Mp = _round_up(M, sub)
    N = 3 * H

    x2 = hidden_states.reshape(M, H)
    if Mp != M:
        x2 = jnp.pad(x2, ((0, Mp - M), (0, 0)))

    tm, tn, tkh = _qkv_tiles(Mp, H, N, itemsize, sub, budget)

    qkv = pl.pallas_call(
        _qkv_proj_kernel,
        out_shape=jax.ShapeDtypeStruct((Mp, N), dtype),
        grid_spec=pltpu.PrefetchScalarGridSpec(
            num_scalar_prefetch=0,
            grid=(Mp // tm, N // tn, H // tkh),
            in_specs=[
                pl.BlockSpec((tm, tkh), lambda i, j, k: (i, k)),   # activation rows
                pl.BlockSpec((tkh, tn), lambda i, j, k: (k, j)),   # packed W^T slab
                pl.BlockSpec((1, tn), lambda i, j, k: (0, j)),     # packed bias slab
            ],
            out_specs=pl.BlockSpec((tm, tn), lambda i, j, k: (i, j)),
            scratch_shapes=[pltpu.VMEM((tm, tn), jnp.float32)],
        ),
        compiler_params=pltpu.CompilerParams(
            dimension_semantics=("parallel", "parallel", "arbitrary"),
            vmem_limit_bytes=budget,
        ),
    )(x2, w_qkv, b_qkv)

    # ---------------- stage 2: flash attention ----------------
    tq, tk = _attn_tiles(S, hd, itemsize, sub, budget)
    n_q, n_k = S // tq, S // tk
    grid = (B, nh, n_q, n_k)
    scale = 1.0 / math.sqrt(hd)

    # Direct head-major path: read Q/K/V head slices straight out of the packed
    # (Mp, 3H) projection output (column block == head) and write the context
    # straight into (M, H).  Requires 128-lane-aligned head_dim and
    # sublane-aligned S to satisfy the (8, 128) block-shape rule.
    fused_heads = (hd % 128 == 0) and (S % sub == 0)

    if fused_heads:
        in_specs = [
            pl.BlockSpec((tq, hd), lambda b, h, qi, ki: (b * n_q + qi, h)),
            pl.BlockSpec((tk, hd), lambda b, h, qi, ki: (b * n_k + ki, nh + h)),
            pl.BlockSpec((tk, hd), lambda b, h, qi, ki: (b * n_k + ki, 2 * nh + h)),
        ]
        out_specs = pl.BlockSpec((tq, hd), lambda b, h, qi, ki: (b * n_q + qi, h))
        out_shape = jax.ShapeDtypeStruct((M, H), dtype)
        operands = (qkv, qkv, qkv)
    else:
        # TODO(synk): a lane-dense hd<128 path would need multi-head packing per
        #             grid step; fall back to XLA layout plumbing (correct, slower).
        def to_heads(y):
            return (y.reshape(B, S, nh, hd)
                     .transpose(0, 2, 1, 3)
                     .reshape(B * nh, S, hd))
        qkv_m = qkv[:M]
        q3 = to_heads(qkv_m[:, :H])
        k3 = to_heads(qkv_m[:, H:2 * H])
        v3 = to_heads(qkv_m[:, 2 * H:])
        in_specs = [
            pl.BlockSpec((None, tq, hd), lambda b, h, qi, ki: (b * nh + h, qi, 0)),
            pl.BlockSpec((None, tk, hd), lambda b, h, qi, ki: (b * nh + h, ki, 0)),
            pl.BlockSpec((None, tk, hd), lambda b, h, qi, ki: (b * nh + h, ki, 0)),
        ]
        out_specs = pl.BlockSpec((None, tq, hd), lambda b, h, qi, ki: (b * nh + h, qi, 0))
        out_shape = jax.ShapeDtypeStruct((B * nh, S, hd), dtype)
        operands = (q3, k3, v3)

    ctx = pl.pallas_call(
        functools.partial(_flash_attn_kernel, scale=scale),
        out_shape=out_shape,
        grid_spec=pltpu.PrefetchScalarGridSpec(
            num_scalar_prefetch=0,
            grid=grid,
            in_specs=in_specs,
            out_specs=out_specs,
            scratch_shapes=[
                pltpu.VMEM((tq, 1), jnp.float32),    # running max
                pltpu.VMEM((tq, 1), jnp.float32),    # running denominator
                pltpu.VMEM((tq, hd), jnp.float32),   # running numerator
            ],
        ),
        compiler_params=pltpu.CompilerParams(
            dimension_semantics=("parallel", "parallel", "parallel", "arbitrary"),
            vmem_limit_bytes=budget,
        ),
    )(*operands)

    if fused_heads:
        return ctx.reshape(B, S, H)
    return (ctx.reshape(B, nh, S, hd)
               .transpose(0, 2, 1, 3)
               .reshape(B, S, H))


# --------------------------------------------------------------------------- reference
def _reference(x, wq, bq, wk, bk, wv, bv, nh):
    B, S, H = x.shape
    hd = H // nh

    def proj(w, b):
        y = jnp.einsum("bsh,oh->bso", x, w) + b
        return y.reshape(B, S, nh, hd).transpose(0, 2, 1, 3)

    q, k, v = proj(wq, bq), proj(wk, bk), proj(wv, bv)
    s = jnp.einsum("bnqd,bnkd->bnqk", q, k) / math.sqrt(hd)
    p = jax.nn.softmax(s, axis=-1)
    ctx = jnp.einsum("bnqk,bnkd->bnqd", p, v)
    return ctx.transpose(0, 2, 1, 3).reshape(B, S, H)


# --------------------------------------------------------------------------- test
if __name__ == "__main__":
    def run_case(key, B, S, H, NH):
        ks = jax.random.split(key, 7)
        x = jax.random.normal(ks[0], (B, S, H), dtype=jnp.float32)
        bound = 1.0 / math.sqrt(H)
        wq = jax.random.uniform(ks[1], (H, H), minval=-bound, maxval=bound, dtype=jnp.float32)
        wk = jax.random.uniform(ks[2], (H, H), minval=-bound, maxval=bound, dtype=jnp.float32)
        wv = jax.random.uniform(ks[3], (H, H), minval=-bound, maxval=bound, dtype=jnp.float32)
        bq = jax.random.uniform(ks[4], (H,), minval=-bound, maxval=bound, dtype=jnp.float32)
        bk = jax.random.uniform(ks[5], (H,), minval=-bound, maxval=bound, dtype=jnp.float32)
        bv = jax.random.uniform(ks[6], (H,), minval=-bound, maxval=bound, dtype=jnp.float32)

        # Pack / pre-transpose the weights ONCE (outside the forward).
        w_qkv, b_qkv = pack_qkv_params(wq, bq, wk, bk, wv, bv)

        out = jax.block_until_ready(perfformer_self_attention(x, w_qkv, b_qkv, NH))
        ref = _reference(x, wq, bq, wk, bk, wv, bv, NH)
        assert out.shape == (B, S, H)
        err = float(jnp.max(jnp.abs(out - ref)))
        assert jnp.allclose(out, ref, atol=2e-3, rtol=2e-3), \
            f"mismatch vs reference (max abs err {err})"

    key = jax.random.PRNGKey(0)
    k1, k2 = jax.random.split(key)
    run_case(k1, B=2, S=128, H=256, NH=2)   # head_dim=128: direct head-major (no-transpose) path
    run_case(k2, B=2, S=8, H=32, NH=4)      # head_dim=8: fallback layout-plumbing path
    print("KERNEL_OK")
</pallas_src>

<mosaic_0001>
module attributes {stable_mosaic.version = 11 : i64} {
  func.func @_qkv_proj_kernel(%arg0: i32, %arg1: i32, %arg2: i32, %arg3: memref<256x256xf32, #tpu.memory_space<vmem>>, %arg4: memref<256x384xf32, #tpu.memory_space<vmem>>, %arg5: memref<1x384xf32, #tpu.memory_space<vmem>>, %arg6: memref<256x384xf32, #tpu.memory_space<vmem>>, %arg7: memref<256x384xf32, #tpu.memory_space<vmem>>) attributes {dimension_semantics = [#tpu.dimension_semantics<parallel>, #tpu.dimension_semantics<parallel>, #tpu.dimension_semantics<arbitrary>], iteration_bounds = array<i64: 1, 2, 1>, scalar_prefetch = 0 : i64, scratch_operands = 1 : i64, tpu.core_type = #tpu.core_type<tc>, window_params = [{transform_indices = @transform_0, window_bounds = array<i64: 256, 256>}, {transform_indices = @transform_1, window_bounds = array<i64: 256, 384>}, {transform_indices = @transform_2, window_bounds = array<i64: 1, 384>}, {transform_indices = @transform_3, window_bounds = array<i64: 256, 384>}]} {
    %c0_i32 = arith.constant 0 : i32
    %0 = arith.cmpi eq, %arg2, %c0_i32 : i32
    %1 = arith.extui %0 : i1 to i32
    %c0_i32_0 = arith.constant 0 : i32
    %2 = arith.cmpi ne, %1, %c0_i32_0 : i32
    scf.if %2 {
      %cst_10 = arith.constant 0.000000e+00 : f32
      %12 = vector.broadcast %cst_10 : f32 to vector<256x384xf32>
      %c0_11 = arith.constant 0 : index
      %c0_12 = arith.constant 0 : index
      %13 = vector.load %arg7[%c0_11, %c0_12] : memref<256x384xf32, #tpu.memory_space<vmem>>, vector<256x384xf32>
      tpu.vector_store %arg7[%c0_11, %c0_12], %12 {strides = array<i32>} : memref<256x384xf32, #tpu.memory_space<vmem>>, vector<256x384xf32>,
    } else {
    }
    %c0 = arith.constant 0 : index
    %c0_1 = arith.constant 0 : index
    %3 = vector.load %arg7[%c0, %c0_1] : memref<256x384xf32, #tpu.memory_space<vmem>>, vector<256x384xf32>
    %c0_2 = arith.constant 0 : index
    %c0_3 = arith.constant 0 : index
    %4 = vector.load %arg3[%c0_2, %c0_3] : memref<256x256xf32, #tpu.memory_space<vmem>>, vector<256x256xf32>
    %c0_4 = arith.constant 0 : index
    %c0_5 = arith.constant 0 : index
    %5 = vector.load %arg4[%c0_4, %c0_5] : memref<256x384xf32, #tpu.memory_space<vmem>>, vector<256x384xf32>
    %cst = arith.constant dense<0.000000e+00> : vector<256x384xf32>
    %6 = tpu.matmul %4, %5, %cst {dimension_numbers = #tpu.dot_dimension_numbers<[1], [0], [0], [1], [0, 0, 1, 1], [], []>} : vector<256x256xf32>, vector<256x384xf32>, vector<256x384xf32> -> vector<256x384xf32>
    %7 = arith.addf %3, %6 : vector<256x384xf32>
    %c0_6 = arith.constant 0 : index
    %c0_7 = arith.constant 0 : index
    %8 = vector.load %arg7[%c0_6, %c0_7] : memref<256x384xf32, #tpu.memory_space<vmem>>, vector<256x384xf32>
    tpu.vector_store %arg7[%c0_6, %c0_7], %7 {strides = array<i32>} : memref<256x384xf32, #tpu.memory_space<vmem>>, vector<256x384xf32>,
    %c0_i32_8 = arith.constant 0 : i32
    %9 = arith.cmpi eq, %arg2, %c0_i32_8 : i32
    %10 = arith.extui %9 : i1 to i32
    %c0_i32_9 = arith.constant 0 : i32
    %11 = arith.cmpi ne, %10, %c0_i32_9 : i32
    scf.if %11 {
      %c0_10 = arith.constant 0 : index
      %c0_11 = arith.constant 0 : index
      %12 = vector.load %arg7[%c0_10, %c0_11] : memref<256x384xf32, #tpu.memory_space<vmem>>, vector<256x384xf32>
      %c0_12 = arith.constant 0 : index
      %c0_13 = arith.constant 0 : index
      %13 = vector.load %arg5[%c0_12, %c0_13] : memref<1x384xf32, #tpu.memory_space<vmem>>, vector<1x384xf32>
      %14 = vector.broadcast %13 : vector<1x384xf32> to vector<256x384xf32>
      %15 = arith.addf %12, %14 : vector<256x384xf32>
      %c0_14 = arith.constant 0 : index
      %c0_15 = arith.constant 0 : index
      %16 = vector.load %arg6[%c0_14, %c0_15] : memref<256x384xf32, #tpu.memory_space<vmem>>, vector<256x384xf32>
      tpu.vector_store %arg6[%c0_14, %c0_15], %15 {strides = array<i32>} : memref<256x384xf32, #tpu.memory_space<vmem>>, vector<256x384xf32>,
    } else {
    }
    return
  }
  func.func @transform_0(%arg0: i32, %arg1: i32, %arg2: i32) -> (i32, i32) {
    %c0_i32 = arith.constant 0 : i32
    return %arg0, %arg2 : i32, i32
  }
  func.func @transform_1(%arg0: i32, %arg1: i32, %arg2: i32) -> (i32, i32) {
    %c0_i32 = arith.constant 0 : i32
    return %arg2, %arg1 : i32, i32
  }
  func.func @transform_2(%arg0: i32, %arg1: i32, %arg2: i32) -> (i32, i32) {
    %c0_i32 = arith.constant 0 : i32
    %c0_i32_0 = arith.constant 0 : i32
    return %c0_i32, %arg1 : i32, i32
  }
  func.func @transform_3(%arg0: i32, %arg1: i32, %arg2: i32) -> (i32, i32) {
    %c0_i32 = arith.constant 0 : i32
    return %arg0, %arg1 : i32, i32
  }
}

</mosaic_0001>

<bundles_post_ra>
// kernel: tpu_custom_call.1
= control target key start
LH: loop header
LB: loop body
LE: loop exit
PB: predicated region body
PF: predicated region fallthrough
CT: control target
= control target key end

     0   :  { %8 = vsyncpa [#allocation4], 0  ;;  %s2609_s0 = inlined_call_operand.hbm [shape: f32[256,256], index: 0, kind: input, shape index: {}]   ;;  %s2610_s1 = inlined_call_operand.hbm [shape: f32[256,768], index: 1, kind: input, shape index: {}]   ;;  %s2611_s2 = inlined_call_operand.hbm [shape: f32[1,768], index: 2, kind: input, shape index: {}]   ;;  %s2612_s3 = inlined_call_operand.hbm [shape: f32[256,768], index: 3, kind: output, shape index: {}]  }
   0x1   :  { %9 = vsyncpa [#allocation7], 0 }
   0x2   :  { %11 = vsyncpa [#allocation7 + $0x1], 0 }
   0x3   :  { %12 = vsyncpa [#allocation5], 0 }
   0x4   :  { %14 = vsyncpa [#allocation5 + $0x1], 0  ;;  %s2074_s12 = smov 0   ;;  %s2076_s13 = smov 0  }
   0x5   :  { %s2078_s14 = smov 0   ;;  %s2080_s15 = smov 0  }
   0x6   :  { %s2082_s16 = smov 0   ;;  %s2084_s17 = smov 0  }
   0x7 LB: > { %s35_s18 = sadd.s32 1, %s2035_s16  ;;  %s76_s19 = sadd.s32 1, %s2027_s14  ;;  %s2039_s17 = sphi %s2084_s17, %s20_s17   ;;  %s2035_s16 = sphi %s2082_s16, %s2632_s16   ;;  %s2031_s15 = sphi %s2080_s15, %s2631_s15   ;;  %s2027_s14 = sphi %s2078_s14, %s2630_s14   ;;  %s2023_s13 = sphi %s2076_s13, %s2629_s13   ;;  %s2019_s12 = sphi %s2074_s12, %s2628_s12  }
   0x8   : > { %p37_p0 = scmp.ge.s32.totalorder %s35_s18, 2  ;;  %p83_p1 = scmp.ne.s32.totalorder %s2027_s14, %s2023_s13 }
   0x9   : > { %p84_p2 = scmp.eq.s32.totalorder %s2039_s17, 0  ;;  %p1812_p5 = scmp.lt.s32.totalorder %s2039_s17, 2 }
   0xa   : > { %s2634_s18 = smov (%p37_p0, %s35_s18), 0  ;;  %s186_s21 = sand.u32 1, %s2039_s17  }
   0xb   : > { %p85_p4 = por %p84_p2, %p83_p1  ;;  %s72_s20 = ssub.s32 %s2035_s16, %s2634_s18 }
   0xc   : > { %p74_p6 = scmp.eq.s32.totalorder %s72_s20, 0  ;;  %s188_s22 = sand.u32 1, %s2027_s14  }
   0xd   : > { %s1779_s23 = smul.u32 384, %s2035_s16  ;;  %p2129_p7 = pnand %p1812_p5, %p85_p4 }
   0xe   : > { %s2122_s24 = scalar_select %p74_p6, %s2027_s14, %s76_s19  }
   0xf   : > { %s1782_s25 = smul.u32 768, %s188_s22  ;;  %s199_s28 = scalar_lea.hbm %s2610_s1, %s1779_s23 }
  0x10   : > { %s2133_s5 = scalar_lea.sflag [#allocation7], %s186_s21  ;;  %p2614_p8 = pneg %p2129_p7 }
  0x11   : > { %s190_s30 = scalar_lea.vmem [#allocation6], %s1782_s25  ;;  %s2041_s7 = smov [#allocation6]  }
  0x12   : > { %s200_s4 = sshll.u32 %s190_s30, 4  ;;  %s1891_s8 = sshll.u32 %s2041_s7, 4  ;;  %s201_s4 = int_to_ptr.vmem [resolvable:$true] %s200_s4  ;;  %s1892_s8 = int_to_ptr.vmem [resolvable:$false] %s1891_s8 }
  0x13   : > { %s1886_s6 = scalar_lea.vmem %s201_s4, 12288  ;;  %s1893_s9 = scalar_lea.vmem %s1892_s8, 24576 }
  0x14   : > { %p1887_p9 = scmp.ne.s32.totalorder %s201_s4, %s1886_s6  ;;  %p1894_p12 = scmp.lt.s32.totalorder %s201_s4, %s1892_s8 }
  0x15   : > { %p1895_p13 = scmp.lt.s32.totalorder %s1893_s9, %s1886_s6 }
  0x16   : > { %p1889_p10 = pnand %p1887_p9, %p2614_p8 }
  0x17   : > { %p1896_p0 = por %p1895_p13, %p1894_p12 }
  0x18   : > { %p1890_p11 = pneg %p1889_p10 }
  0x1a   : > { %p1897_p2 = pnand %p1896_p0, %p1890_p11 }
  0x1c   : > { %1900 = shalt.err (!%p1897_p2)
}
  0x1d   : > { %s2042_s10 = smov 768   ;;  %s2043_s11 = smov 384  }
  0x1e   : > { %s2044_s19 = smov 24   ;;  %s2144_s20 = sadd.s32 4294967295, %s2039_s17  }
  0x1f   : > { %1803 = dma.hbm_to_vmem [thread:$0]  (!%p2129_p7), %s199_s28, 12288, %s201_s4, %s2133_s5, %s2042_s10, %s2043_s11, %s2044_s19  }
  0x20   : > { %s1768_s21 = sadd.s32 4294967294, %s2039_s17   ;;  %p89_p4 = scmp.ne.s32.totalorder %s2023_s13, %s2019_s12 }
  0x21   : > { %p2613_p5 = scmp.eq.s32.totalorder %s2144_s20, 0  ;;  %p141_p6 = scmp.eq.s32.totalorder %s2144_s20, 1 }
  0x22   : > { %p147_p9 = scmp.eq.s32.totalorder %s1768_s21, 1  ;;  %p1769_p11 = scmp.ge.s32.totalorder %s2039_s17, 1 }
  0x23   : > { %p2153_p10 = por %p2613_p5, %p89_p4  ;;  %p2161_p12 = por %p141_p6, %p83_p1 }
  0x24   : > { %p2165_p13 = por %p147_p9, %p89_p4  ;;  %p154_p0 = scmp.lt.s32.totalorder %s2039_s17, 3 }
  0x25   : > { %s2618_s25 = scalar_select %p2161_p12, 1, 0 }
  0x26   : > { %s2619_s26 = scalar_select %p2165_p13, 1, 0 }
  0x27   : > { %p2170_p2 = pnand %p1769_p11, %p154_p0  ;;  %s2045_s28 = smov [#allocation3]  }
  0x28   : > { %s172_s30 = sshll.u32 %s2045_s28, 4  ;;  %s1783_s4 = smul.u32 3, %s188_s22  ;;  %s173_s30 = int_to_ptr.vmem [resolvable:$true] %s172_s30 }
  0x29   : > { %p1796_p3 = pneg %p2170_p2  ;;  %s1780_s6 = smul.u32 48, %s2035_s16 }
  0x2a   : > { %s214_s11 = scalar_lea.vmem [#allocation8], %s1783_s4  ;;  %s1912_s21 = scalar_lea.vmem %s173_s30, 8192 }
  0x2b   : > { %p2181_p1 = pnand %p1796_p3, %p2613_p5  ;;  %s2188_s10 = scalar_lea.hbm %s2611_s2, %s1780_s6 }
  0x2c   : > { %s222_s19 = sshll.u32 %s214_s11, 4  ;;  %p1913_p6 = scmp.ne.s32.totalorder %s173_s30, %s1912_s21  ;;  %s223_s19 = int_to_ptr.vmem [resolvable:$true] %s222_s19 }
  0x2d   : > { %p1903_p4 = pneg %p2181_p1  ;;  %p1920_p0 = scmp.lt.s32.totalorder %s173_s30, %s173_s30 }
  0x2e   : > { %p1921_p3 = scmp.lt.s32.totalorder %s1912_s21, %s1912_s21 }
  0x2f   : > { %p1915_p9 = pnand %p1913_p6, %p1903_p4 }
  0x30   : > { %p1922_p5 = por %p1921_p3, %p1920_p0 }
  0x31   : > { %p1916_p11 = pneg %p1915_p9 }
  0x33   : > { %p1923_p8 = pnand %p1922_p5, %p1916_p11 }
  0x35   : > { %1926 = shalt.err (!%p1923_p8)
}
  0x36   : > { %s2046_s22 = smov 256   ;;  %s2047_s28 = smov 16  }
  0x37   : > { %1799 = dma.hbm_to_vmem [thread:$0]  (!%p2181_p1), %s2609_s0, 8192, %s173_s30, [#allocation4], %s2046_s22, %s2046_s22, %s2047_s28  }
  0x38   : > { %s1940_s8 = scalar_lea.vmem %s223_s19, 48  ;;  %p2622_p12 = pneg %p2129_p7 }
  0x39   : > { %p1941_p13 = scmp.ne.s32.totalorder %s223_s19, %s1940_s8  ;;  %s2048_s9 = smov [#allocation8]  }
  0x3a   : > { %s1945_s11 = sshll.u32 %s2048_s9, 4  ;;  %s1946_s11 = int_to_ptr.vmem [resolvable:$false] %s1945_s11 }
  0x3b   : > { %p1943_p4 = pnand %p1941_p13, %p2622_p12  ;;  %s1947_s21 = scalar_lea.vmem %s1946_s11, 96 }
  0x3c   : > { %p1948_p8 = scmp.lt.s32.totalorder %s223_s19, %s1946_s11  ;;  %p1949_p5 = scmp.lt.s32.totalorder %s1947_s21, %s1940_s8 }
  0x3d   : > { %p1944_p6 = pneg %p1943_p4 }
  0x3e   : > { %p1950_p9 = por %p1949_p5, %p1948_p8 }
  0x40   : > { %p1951_p11 = pnand %p1950_p9, %p1944_p6 }
  0x42   : > { %1954 = shalt.err (!%p1951_p11)
}
  0x43   : > { %1806 = dma.hbm_to_vmem [thread:$0]  (!%p2129_p7), %s2188_s10, 48, %s223_s19, %s2133_s5  }
  0x44   : > { %231 = sbr.rel (%p2170_p2) target bundleno = 481 (0x1e1), region = 32  ;;  %p2623_p12 = scmp.eq.s32.totalorder (!%p2170_p2), %s2144_s20, 0 }
  0x49   : > { %2006 = dma.done.wait (%p2623_p12), [#allocation4], 8192   ;;  %p2624_p13 = pmov %p2623_p12 }
  0x4a   : > { %s237_s30 = sand.u32 1, %s2144_s20   ;;  %s2212_s7 = sand.u32 1, %s2023_s13  }
  0x4b   : > { %2008 = vsyncadd (%p2624_p13), [#allocation4], 4294959104  ;;  %s1784_s29 = smul.u32 768, %s2212_s7  ;;  %s238_s22 = scalar_lea.sflag [#allocation7], %s237_s30 }
  0x4d   : > { %s2217_s5 = scalar_lea.vmem [#allocation6], %s1784_s29 }
  0x4e   : > { %2010 = dma.done.wait (%p2153_p10), %s238_s22, 12336  }
  0x4f   : > { %2012 = vsyncadd (%p2153_p10), %s238_s22, 4294954960  ;;  %v2049_v0 = vmov 0.0   ;;  %v591_v1 = vld [vmem:[%s2217_s5 + $0x170] sm:$0xff]  ;;  %v590_v2 = vld [vmem:[%s2217_s5 + $0x168] sm:$0xff]  ;;  %s1785_s20 = smul.u32 3, %s2212_s7  ;;  %s2362_s27 = scalar_lea.vmem [#allocation9], %s1784_s29 }
  0x50   : > { %898 = vmatprep.subr.mxu1 %v2049_v0  ;;  %v592_v3 = vld [vmem:[%s2217_s5 + $0x178] sm:$0xff]  ;;  %641 = vmatprep.subr.mxu0 %v591_v1  ;;  %v587_v5 = vld [vmem:[%s2217_s5 + $0x150] sm:$0xff]  ;;  %v589_v6 = vld [vmem:[%s2217_s5 + $0x160] sm:$0xff]  ;;  %s1781_s10 = smul.u32 384, %s2031_s15  ;;  %s1640_s19 = sshll.u32 %s2362_s27, 4  ;;  %s2557_s19 = int_to_ptr.vmem [resolvable:$true] %s1640_s19 }
  0x51   : > { %899 = vmatpush1.msra.mxu1 %v592_v3  ;;  %v588_v4 = vld [vmem:[%s2217_s5 + $0x158] sm:$0xff]  ;;  %642 = vmatpush1.msra.mxu0 %v590_v2  ;;  %v585_v7 = vld [vmem:[%s2217_s5 + $0x140] sm:$0xff]  ;;  %v586_v8 = vld [vmem:[%s2217_s5 + $0x148] sm:$0xff]  ;;  %s250_s23 = scalar_lea.vmem [#allocation8], %s1785_s20  ;;  %s1624_s4 = scalar_lea.sflag [#allocation5], %s2212_s7 }
  0x52   : > { %900 = vmatprep.subr.mxu1 %v2049_v0  ;;  %643 = vmatprep.subr.mxu0 %v588_v4  ;;  %v584_v9 = vld [vmem:[%s2217_s5 + $0x138] sm:$0xff]  ;;  %v582_v10 = vld [vmem:[%s2217_s5 + $0x128] sm:$0xff]  ;;  %v583_v11 = vld [vmem:[%s2217_s5 + $0x130] sm:$0xff]  ;;  %s2554_s6 = scalar_lea.hbm %s2612_s3, %s1781_s10  ;;  %s1955_s8 = scalar_lea.vmem %s2557_s19, 12288 }
  0x53   : > { %901 = vmatpush1.msra.mxu1 %v589_v6  ;;  %644 = vmatpush1.msra.mxu0 %v587_v5  ;;  %v581_v12 = vld [vmem:[%s2217_s5 + $0x120] sm:$0xff]  ;;  %v579_v13 = vld [vmem:[%s2217_s5 + $0x110] sm:$0xff]  ;;  %v580_v14 = vld [vmem:[%s2217_s5 + $0x118] sm:$0xff]  ;;  %p1956_p7 = scmp.ne.s32.totalorder %s2557_s19, %s1955_s8  ;;  %p2625_p10 = scmp.ne.s32.totalorder %s2618_s25, 0 }
  0x54   : > { %902 = vmatprep.subr.mxu1 %v2049_v0  ;;  %645 = vmatprep.subr.mxu0 %v585_v7  ;;  %v578_v15 = vld [vmem:[%s2217_s5 + $0x108] sm:$0xff]  ;;  %v576_v16 = vld [vmem:[%s2217_s5 + $0xf8] sm:$0xff]  ;;  %v577_v17 = vld [vmem:[%s2217_s5 + $0x100] sm:$0xff]  ;;  %s2050_s9 = smov [#allocation9]  }
  0x55   : > { %903 = vmatpush1.msra.mxu1 %v586_v8  ;;  %646 = vmatpush1.msra.mxu0 %v584_v9  ;;  %v575_v18 = vld [vmem:[%s2217_s5 + $0xf0] sm:$0xff]  ;;  %v573_v19 = vld [vmem:[%s2217_s5 + $0xe0] sm:$0xff]  ;;  %v574_v20 = vld [vmem:[%s2217_s5 + $0xe8] sm:$0xff]  ;;  %p1957_p2 = pnand %p1956_p7, %p2625_p10  ;;  %s1959_s11 = sshll.u32 %s2050_s9, 4  ;;  %s1960_s11 = int_to_ptr.vmem [resolvable:$false] %s1959_s11 }
  0x56   : > { %904 = vmatprep.subr.mxu1 %v2049_v0  ;;  %647 = vmatprep.subr.mxu0 %v582_v10  ;;  %v572_v21 = vld [vmem:[%s2217_s5 + $0xd8] sm:$0xff]  ;;  %v570_v22 = vld [vmem:[%s2217_s5 + $0xc8] sm:$0xff]  ;;  %v571_v23 = vld [vmem:[%s2217_s5 + $0xd0] sm:$0xff]  ;;  %s1961_s21 = scalar_lea.vmem %s1960_s11, 24576  ;;  %p1962_p0 = scmp.lt.s32.totalorder %s2557_s19, %s1960_s11 }
  0x57   : > { %905 = vmatpush1.msra.mxu1 %v583_v11  ;;  %648 = vmatpush1.msra.mxu0 %v581_v12  ;;  %v569_v24 = vld [vmem:[%s2217_s5 + $0xc0] sm:$0xff]  ;;  %v567_v25 = vld [vmem:[%s2217_s5 + $0xb0] sm:$0xff]  ;;  %v568_v26 = vld [vmem:[%s2217_s5 + $0xb8] sm:$0xff]  ;;  %p1958_p1 = pneg %p1957_p2  ;;  %p1963_p3 = scmp.lt.s32.totalorder %s1961_s21, %s1955_s8 }
  0x58   : > { %906 = vmatprep.subr.mxu1 %v2049_v0  ;;  %649 = vmatprep.subr.mxu0 %v579_v13  ;;  %v566_v27 = vld [vmem:[%s2217_s5 + $0xa8] sm:$0xff]  ;;  %v564_v28 = vld [vmem:[%s2217_s5 + $0x98] sm:$0xff]  ;;  %v565_v29 = vld [vmem:[%s2217_s5 + $0xa0] sm:$0xff] }
  0x59   : > { %907 = vmatpush1.msra.mxu1 %v580_v14  ;;  %650 = vmatpush1.msra.mxu0 %v578_v15  ;;  %v563_v30 = vld [vmem:[%s2217_s5 + $0x90] sm:$0xff]  ;;  %v561_v31 = vld [vmem:[%s2217_s5 + $0x80] sm:$0xff]  ;;  %v562_v32 = vld [vmem:[%s2217_s5 + $0x88] sm:$0xff]  ;;  %p1964_p4 = por %p1963_p3, %p1962_p0 }
  0x5a   : > { %908 = vmatprep.subr.mxu1 %v2049_v0  ;;  %651 = vmatprep.subr.mxu0 %v576_v16  ;;  %v560_v33 = vld [vmem:[%s2217_s5 + $0x78] sm:$0xff]  ;;  %v558_v34 = vld [vmem:[%s2217_s5 + $0x68] sm:$0xff]  ;;  %v559_v35 = vld [vmem:[%s2217_s5 + $0x70] sm:$0xff] }
  0x5b   : > { %909 = vmatpush1.msra.mxu1 %v577_v17  ;;  %652 = vmatpush1.msra.mxu0 %v575_v18  ;;  %v557_v36 = vld [vmem:[%s2217_s5 + $0x60] sm:$0xff]  ;;  %v555_v37 = vld [vmem:[%s2217_s5 + $0x50] sm:$0xff]  ;;  %v556_v38 = vld [vmem:[%s2217_s5 + $0x58] sm:$0xff]  ;;  %p1965_p6 = pnand %p1964_p4, %p1958_p1 }
  0x5c   : > { %910 = vmatprep.subr.mxu1 %v2049_v0  ;;  %653 = vmatprep.subr.mxu0 %v573_v19  ;;  %v554_v39 = vld [vmem:[%s2217_s5 + $0x48] sm:$0xff]  ;;  %v552_v40 = vld [vmem:[%s2217_s5 + $0x38] sm:$0xff]  ;;  %v553_v41 = vld [vmem:[%s2217_s5 + $0x40] sm:$0xff] }
  0x5d   : > { %911 = vmatpush1.msra.mxu1 %v574_v20  ;;  %654 = vmatpush1.msra.mxu0 %v572_v21  ;;  %v551_v42 = vld [vmem:[%s2217_s5 + $0x30] sm:$0xff]  ;;  %v549_v43 = vld [vmem:[%s2217_s5 + $0x20] sm:$0xff]  ;;  %v550_v44 = vld [vmem:[%s2217_s5 + $0x28] sm:$0xff] }
  0x5e   : > { %912 = vmatprep.subr.mxu1 %v2049_v0  ;;  %655 = vmatprep.subr.mxu0 %v570_v22  ;;  %v548_v45 = vld [vmem:[%s2217_s5 + $0x18] sm:$0xff]  ;;  %v546_v46 = vld [vmem:[%s2217_s5 + $0x8] sm:$0xff]  ;;  %v547_v47 = vld [vmem:[%s2217_s5 + $0x10] sm:$0xff] }
  0x5f   : > { %913 = vmatpush1.msra.mxu1 %v571_v23  ;;  %656 = vmatpush1.msra.mxu0 %v569_v24  ;;  %v545_v48 = vld [vmem:[%s2217_s5] sm:$0xff]  ;;  %v639_v49 = vld [vmem:[%s2217_s5 + $0x2f0] sm:$0xff]  ;;  %v640_v50 = vld [vmem:[%s2217_s5 + $0x2f8] sm:$0xff] }
  0x60   : > { %914 = vmatprep.subr.mxu1 %v2049_v0  ;;  %657 = vmatprep.subr.mxu0 %v567_v25  ;;  %v638_v51 = vld [vmem:[%s2217_s5 + $0x2e8] sm:$0xff]  ;;  %v636_v52 = vld [vmem:[%s2217_s5 + $0x2d8] sm:$0xff]  ;;  %v637_v53 = vld [vmem:[%s2217_s5 + $0x2e0] sm:$0xff] }
  0x61   : > { %915 = vmatpush1.msra.mxu1 %v568_v26  ;;  %658 = vmatpush1.msra.mxu0 %v566_v27  ;;  %v635_v54 = vld [vmem:[%s2217_s5 + $0x2d0] sm:$0xff]  ;;  %v633_v55 = vld [vmem:[%s2217_s5 + $0x2c0] sm:$0xff]  ;;  %v634_v56 = vld [vmem:[%s2217_s5 + $0x2c8] sm:$0xff] }
  0x62   : > { %916 = vmatprep.subr.mxu1 %v2049_v0  ;;  %659 = vmatprep.subr.mxu0 %v564_v28  ;;  %v632_v57 = vld [vmem:[%s2217_s5 + $0x2b8] sm:$0xff]  ;;  %v630_v58 = vld [vmem:[%s2217_s5 + $0x2a8] sm:$0xff]  ;;  %v631_v59 = vld [vmem:[%s2217_s5 + $0x2b0] sm:$0xff] }
  0x63   : > { %917 = vmatpush1.msra.mxu1 %v565_v29  ;;  %660 = vmatpush1.msra.mxu0 %v563_v30  ;;  %v629_v60 = vld [vmem:[%s2217_s5 + $0x2a0] sm:$0xff]  ;;  %v627_v61 = vld [vmem:[%s2217_s5 + $0x290] sm:$0xff]  ;;  %v628_v62 = vld [vmem:[%s2217_s5 + $0x298] sm:$0xff] }
  0x64   : > { %918 = vmatprep.subr.mxu1 %v2049_v0  ;;  %661 = vmatprep.subr.mxu0 %v561_v31  ;;  %v626_v63 = vld [vmem:[%s2217_s5 + $0x288] sm:$0xff]  ;;  %v624_v1 = vld [vmem:[%s2217_s5 + $0x278] sm:$0xff]  ;;  %v625_v2 = vld [vmem:[%s2217_s5 + $0x280] sm:$0xff] }
  0x65   : > { %919 = vmatpush1.msra.mxu1 %v562_v32  ;;  %662 = vmatpush1.msra.mxu0 %v560_v33  ;;  %v623_v3 = vld [vmem:[%s2217_s5 + $0x270] sm:$0xff]  ;;  %v621_v4 = vld [vmem:[%s2217_s5 + $0x260] sm:$0xff]  ;;  %v622_v5 = vld [vmem:[%s2217_s5 + $0x268] sm:$0xff] }
  0x66   : > { %920 = vmatprep.subr.mxu1 %v2049_v0  ;;  %663 = vmatprep.subr.mxu0 %v558_v34  ;;  %v620_v6 = vld [vmem:[%s2217_s5 + $0x258] sm:$0xff]  ;;  %v618_v7 = vld [vmem:[%s2217_s5 + $0x248] sm:$0xff]  ;;  %v619_v8 = vld [vmem:[%s2217_s5 + $0x250] sm:$0xff] }
  0x67   : > { %921 = vmatpush1.msra.mxu1 %v559_v35  ;;  %664 = vmatpush1.msra.mxu0 %v557_v36  ;;  %v617_v9 = vld [vmem:[%s2217_s5 + $0x240] sm:$0xff]  ;;  %v615_v10 = vld [vmem:[%s2217_s5 + $0x230] sm:$0xff]  ;;  %v616_v11 = vld [vmem:[%s2217_s5 + $0x238] sm:$0xff] }
  0x68   : > { %922 = vmatprep.subr.mxu1 %v2049_v0  ;;  %665 = vmatprep.subr.mxu0 %v555_v37  ;;  %v614_v12 = vld [vmem:[%s2217_s5 + $0x228] sm:$0xff]  ;;  %v612_v13 = vld [vmem:[%s2217_s5 + $0x218] sm:$0xff]  ;;  %v613_v14 = vld [vmem:[%s2217_s5 + $0x220] sm:$0xff] }
  0x69   : > { %923 = vmatpush1.msra.mxu1 %v556_v38  ;;  %666 = vmatpush1.msra.mxu0 %v554_v39  ;;  %v611_v15 = vld [vmem:[%s2217_s5 + $0x210] sm:$0xff]  ;;  %v609_v16 = vld [vmem:[%s2217_s5 + $0x200] sm:$0xff]  ;;  %v610_v17 = vld [vmem:[%s2217_s5 + $0x208] sm:$0xff] }
  0x6a   : > { %924 = vmatprep.subr.mxu1 %v2049_v0  ;;  %667 = vmatprep.subr.mxu0 %v552_v40  ;;  %v608_v18 = vld [vmem:[%s2217_s5 + $0x1f8] sm:$0xff]  ;;  %v606_v19 = vld [vmem:[%s2217_s5 + $0x1e8] sm:$0xff]  ;;  %v607_v20 = vld [vmem:[%s2217_s5 + $0x1f0] sm:$0xff] }
  0x6b   : > { %925 = vmatpush1.msra.mxu1 %v553_v41  ;;  %668 = vmatpush1.msra.mxu0 %v551_v42  ;;  %v605_v21 = vld [vmem:[%s2217_s5 + $0x1e0] sm:$0xff]  ;;  %v603_v22 = vld [vmem:[%s2217_s5 + $0x1d0] sm:$0xff]  ;;  %v604_v23 = vld [vmem:[%s2217_s5 + $0x1d8] sm:$0xff] }
  0x6c   : > { %926 = vmatprep.subr.mxu1 %v2049_v0  ;;  %669 = vmatprep.subr.mxu0 %v549_v43  ;;  %v602_v24 = vld [vmem:[%s2217_s5 + $0x1c8] sm:$0xff]  ;;  %v600_v25 = vld [vmem:[%s2217_s5 + $0x1b8] sm:$0xff]  ;;  %v601_v26 = vld [vmem:[%s2217_s5 + $0x1c0] sm:$0xff] }
  0x6d   : > { %927 = vmatpush1.msra.mxu1 %v550_v44  ;;  %670 = vmatpush1.msra.mxu0 %v548_v45  ;;  %v599_v27 = vld [vmem:[%s2217_s5 + $0x1b0] sm:$0xff]  ;;  %v597_v28 = vld [vmem:[%s2217_s5 + $0x1a0] sm:$0xff]  ;;  %v598_v29 = vld [vmem:[%s2217_s5 + $0x1a8] sm:$0xff] }
  0x6e   : > { %928 = vmatprep.subr.mxu1 %v2049_v0  ;;  %671 = vmatprep.subr.mxu0 %v546_v46  ;;  %v596_v30 = vld [vmem:[%s2217_s5 + $0x198] sm:$0xff]  ;;  %v594_v31 = vld [vmem:[%s2217_s5 + $0x188] sm:$0xff]  ;;  %v593_v33 = vld [vmem:[%s2217_s5 + $0x180] sm:$0xff] }
  0x6f   : > { %929 = vmatpush1.msra.mxu1 %v547_v47  ;;  %672 = vmatpush1.msra.mxu0 %v545_v48  ;;  %v482_v32 = vld [vmem:[#allocation3 + $0x8] sm:$0xff]  ;;  %v595_v34 = vld [vmem:[%s2217_s5 + $0x190] sm:$0xff]  ;;  %v481_v35 = vld [vmem:[#allocation3] sm:$0xff] }
  0x70   : > { %930 = vmatprep.subr.mxu1 %v2049_v0  ;;  %673 = vmatprep.subr.mxu0 %v639_v49  ;;  %v484_v36 = vld [vmem:[#allocation3 + $0x18] sm:$0xff]  ;;  %v483_v37 = vld [vmem:[#allocation3 + $0x10] sm:$0xff]  ;;  %v486_v38 = vld [vmem:[#allocation3 + $0x28] sm:$0xff] }
  0x71   : > { %931 = vmatpush2.msra.mxu1 %v640_v50  ;;  %674 = vmatpush2.msra.mxu0 %v638_v51  ;;  %v485_v39 = vld [vmem:[#allocation3 + $0x20] sm:$0xff]  ;;  %v488_v40 = vld [vmem:[#allocation3 + $0x38] sm:$0xff]  ;;  %v490_v41 = vld [vmem:[#allocation3 + $0x48] sm:$0xff] }
  0x72   : > { %932 = vmatprep.subr.mxu1 %v2049_v0  ;;  %675 = vmatprep.subr.mxu0 %v636_v52  ;;  %v489_v42 = vld [vmem:[#allocation3 + $0x40] sm:$0xff]  ;;  %v492_v43 = vld [vmem:[#allocation3 + $0x58] sm:$0xff]  ;;  %v491_v44 = vld [vmem:[#allocation3 + $0x50] sm:$0xff] }
  0x73   : > { %933 = vmatpush2.msra.mxu1 %v637_v53  ;;  %676 = vmatpush2.msra.mxu0 %v635_v54  ;;  %v494_v45 = vld [vmem:[#allocation3 + $0x68] sm:$0xff]  ;;  %v493_v46 = vld [vmem:[#allocation3 + $0x60] sm:$0xff]  ;;  %v496_v47 = vld [vmem:[#allocation3 + $0x78] sm:$0xff] }
  0x74   : > { %934 = vmatprep.subr.mxu1 %v2049_v0  ;;  %677 = vmatprep.subr.mxu0 %v633_v55  ;;  %v495_v48 = vld [vmem:[#allocation3 + $0x70] sm:$0xff]  ;;  %v498_v49 = vld [vmem:[#allocation3 + $0x88] sm:$0xff]  ;;  %v497_v50 = vld [vmem:[#allocation3 + $0x80] sm:$0xff] }
  0x75   : > { %935 = vmatpush2.msra.mxu1 %v634_v56  ;;  %678 = vmatpush2.msra.mxu0 %v632_v57  ;;  %v500_v51 = vld [vmem:[#allocation3 + $0x98] sm:$0xff]  ;;  %v499_v52 = vld [vmem:[#allocation3 + $0x90] sm:$0xff]  ;;  %v502_v53 = vld [vmem:[#allocation3 + $0xa8] sm:$0xff] }
  0x76   : > { %936 = vmatprep.subr.mxu1 %v2049_v0  ;;  %679 = vmatprep.subr.mxu0 %v630_v58  ;;  %v501_v54 = vld [vmem:[#allocation3 + $0xa0] sm:$0xff]  ;;  %v504_v55 = vld [vmem:[#allocation3 + $0xb8] sm:$0xff]  ;;  %v503_v56 = vld [vmem:[#allocation3 + $0xb0] sm:$0xff] }
  0x77   : > { %937 = vmatpush2.msra.mxu1 %v631_v59  ;;  %680 = vmatpush2.msra.mxu0 %v629_v60  ;;  %v506_v57 = vld [vmem:[#allocation3 + $0xc8] sm:$0xff]  ;;  %v505_v58 = vld [vmem:[#allocation3 + $0xc0] sm:$0xff]  ;;  %v508_v59 = vld [vmem:[#allocation3 + $0xd8] sm:$0xff] }
  0x78   : > { %938 = vmatprep.subr.mxu1 %v2049_v0  ;;  %681 = vmatprep.subr.mxu0 %v627_v61  ;;  %v507_v60 = vld [vmem:[#allocation3 + $0xd0] sm:$0xff]  ;;  %v510_v61 = vld [vmem:[#allocation3 + $0xe8] sm:$0xff] }
  0x79   : > { %939 = vmatpush2.msra.mxu1 %v628_v62  ;;  %682 = vmatpush2.msra.mxu0 %v626_v63  ;;  %v509_v62 = vld [vmem:[#allocation3 + $0xe0] sm:$0xff]  ;;  %v512_v63 = vld [vmem:[#allocation3 + $0xf8] sm:$0xff] }
  0x7a   : > { %940 = vmatprep.subr.mxu1 %v2049_v0  ;;  %683 = vmatprep.subr.mxu0 %v624_v1  ;;  %v511_v1 = vld [vmem:[#allocation3 + $0xf0] sm:$0xff] }
  0x7b   : > { %941 = vmatpush2.msra.mxu1 %v625_v2  ;;  %684 = vmatpush2.msra.mxu0 %v623_v3  ;;  %v514_v2 = vld [vmem:[#allocation3 + $0x108] sm:$0xff]  ;;  %v513_v3 = vld [vmem:[#allocation3 + $0x100] sm:$0xff] }
  0x7c   : > { %942 = vmatprep.subr.mxu1 %v2049_v0  ;;  %685 = vmatprep.subr.mxu0 %v621_v4  ;;  %v516_v4 = vld [vmem:[#allocation3 + $0x118] sm:$0xff] }
  0x7d   : > { %943 = vmatpush2.msra.mxu1 %v622_v5  ;;  %686 = vmatpush2.msra.mxu0 %v620_v6  ;;  %v515_v5 = vld [vmem:[#allocation3 + $0x110] sm:$0xff]  ;;  %v518_v6 = vld [vmem:[#allocation3 + $0x128] sm:$0xff] }
  0x7e   : > { %944 = vmatprep.subr.mxu1 %v2049_v0  ;;  %687 = vmatprep.subr.mxu0 %v618_v7  ;;  %v517_v7 = vld [vmem:[#allocation3 + $0x120] sm:$0xff] }
  0x7f   : > { %945 = vmatpush2.msra.mxu1 %v619_v8  ;;  %688 = vmatpush2.msra.mxu0 %v617_v9  ;;  %v520_v8 = vld [vmem:[#allocation3 + $0x138] sm:$0xff]  ;;  %v519_v9 = vld [vmem:[#allocation3 + $0x130] sm:$0xff] }
  0x80   : > { %946 = vmatprep.subr.mxu1 %v2049_v0  ;;  %689 = vmatprep.subr.mxu0 %v615_v10  ;;  %v522_v10 = vld [vmem:[#allocation3 + $0x148] sm:$0xff] }
  0x81   : > { %947 = vmatpush2.msra.mxu1 %v616_v11  ;;  %690 = vmatpush2.msra.mxu0 %v614_v12  ;;  %v521_v11 = vld [vmem:[#allocation3 + $0x140] sm:$0xff]  ;;  %v524_v12 = vld [vmem:[#allocation3 + $0x158] sm:$0xff] }
  0x82   : > { %948 = vmatprep.subr.mxu1 %v2049_v0  ;;  %691 = vmatprep.subr.mxu0 %v612_v13  ;;  %v523_v13 = vld [vmem:[#allocation3 + $0x150] sm:$0xff] }
  0x83   : > { %949 = vmatpush2.msra.mxu1 %v613_v14  ;;  %692 = vmatpush2.msra.mxu0 %v611_v15  ;;  %v526_v14 = vld [vmem:[#allocation3 + $0x168] sm:$0xff]  ;;  %v525_v15 = vld [vmem:[#allocation3 + $0x160] sm:$0xff] }
  0x84   : > { %950 = vmatprep.subr.mxu1 %v2049_v0  ;;  %693 = vmatprep.subr.mxu0 %v609_v16  ;;  %v528_v16 = vld [vmem:[#allocation3 + $0x178] sm:$0xff] }
  0x85   : > { %951 = vmatpush2.msra.mxu1 %v610_v17  ;;  %694 = vmatpush2.msra.mxu0 %v608_v18  ;;  %v527_v17 = vld [vmem:[#allocation3 + $0x170] sm:$0xff]  ;;  %v530_v18 = vld [vmem:[#allocation3 + $0x188] sm:$0xff] }
  0x86   : > { %952 = vmatprep.subr.mxu1 %v2049_v0  ;;  %695 = vmatprep.subr.mxu0 %v606_v19  ;;  %v529_v19 = vld [vmem:[#allocation3 + $0x180] sm:$0xff] }
  0x87   : > { %953 = vmatpush2.msra.mxu1 %v607_v20  ;;  %696 = vmatpush2.msra.mxu0 %v605_v21  ;;  %v532_v20 = vld [vmem:[#allocation3 + $0x198] sm:$0xff]  ;;  %v531_v21 = vld [vmem:[#allocation3 + $0x190] sm:$0xff] }
  0x88   : > { %954 = vmatprep.subr.mxu1 %v2049_v0  ;;  %697 = vmatprep.subr.mxu0 %v603_v22  ;;  %v534_v22 = vld [vmem:[#allocation3 + $0x1a8] sm:$0xff] }
  0x89   : > { %955 = vmatpush2.msra.mxu1 %v604_v23  ;;  %698 = vmatpush2.msra.mxu0 %v602_v24  ;;  %v533_v23 = vld [vmem:[#allocation3 + $0x1a0] sm:$0xff]  ;;  %v536_v24 = vld [vmem:[#allocation3 + $0x1b8] sm:$0xff] }
  0x8a   : > { %956 = vmatprep.subr.mxu1 %v2049_v0  ;;  %699 = vmatprep.subr.mxu0 %v600_v25  ;;  %v535_v25 = vld [vmem:[#allocation3 + $0x1b0] sm:$0xff] }
  0x8b   : > { %957 = vmatpush2.msra.mxu1 %v601_v26  ;;  %700 = vmatpush2.msra.mxu0 %v599_v27  ;;  %v538_v26 = vld [vmem:[#allocation3 + $0x1c8] sm:$0xff]  ;;  %v537_v27 = vld [vmem:[#allocation3 + $0x1c0] sm:$0xff] }
  0x8c   : > { %958 = vmatprep.subr.mxu1 %v2049_v0  ;;  %701 = vmatprep.subr.mxu0 %v597_v28  ;;  %v540_v28 = vld [vmem:[#allocation3 + $0x1d8] sm:$0xff] }
  0x8d   : > { %959 = vmatpush2.msra.mxu1 %v598_v29  ;;  %702 = vmatpush2.msra.mxu0 %v596_v30  ;;  %v539_v29 = vld [vmem:[#allocation3 + $0x1d0] sm:$0xff]  ;;  %v542_v30 = vld [vmem:[#allocation3 + $0x1e8] sm:$0xff] }
  0x8e   : > { %960 = vmatprep.subr.mxu1 %v2049_v0  ;;  %703 = vmatprep.subr.mxu0 %v594_v31  ;;  %v487_v0 = vld [vmem:[#allocation3 + $0x30] sm:$0xff]  ;;  %v541_v31 = vld [vmem:[#allocation3 + $0x1e0] sm:$0xff] }
  0x8f   : > { %705 = vmatprep.mubr.f32.mxu0 %v482_v32  ;;  %704 = vmatpush2.msra.mxu0 %v593_v33  ;;  %v543_v33 = vld [vmem:[#allocation3 + $0x1f0] sm:$0xff] }
  0x90   : > { %961 = vmatpush2.msra.mxu1 %v595_v34  ;;  %962 = vmatprep.mubr.f32.mxu1 %v482_v32  ;;  %v544_v32 = vld [vmem:[#allocation3 + $0x1f8] sm:$0xff]  ;;  %v1416_v34 = vlaneseq }
  0x91   : > { %706 = vmatmul.mubr.f32.vlgmr.msra.gmra.mxu0 %v481_v35  ;;  %963 = vmatmul.mubr.f32.vlgmr.msra.gmra.mxu1 %v481_v35 }
  0x92   : > { %711 = vmatprep.mubr.f32.mxu0 %v484_v36  ;;  %967 = vmatprep.mubr.f32.mxu1 %v484_v36  ;;  %v1417_v35 = vshrl.u32 %v1416_v34, 7 }
  0x94   : > { %v1418_v36 = vsub.s32 0, %v1417_v35 }
  0x95   : > { %712 = vmatmul.mubr.f32.gmra.mxu0 %v483_v37  ;;  %968 = vmatmul.mubr.f32.gmra.mxu1 %v483_v37  ;;  %v1414_v37 = vld [vmem:[%s250_s23] sm:$0x7] }
  0x96   : > { %717 = vmatprep.mubr.f32.mxu0 %v486_v38  ;;  %972 = vmatprep.mubr.f32.mxu1 %v486_v38  ;;  %v1426_v38 = vsub.s32 2, %v1417_v35 }
  0x99   : > { %718 = vmatmul.mubr.f32.gmra.mxu0 %v485_v39  ;;  %973 = vmatmul.mubr.f32.gmra.mxu1 %v485_v39  ;;  %v1422_v39 = vsub.s32 1, %v1417_v35 }
  0x9a   : > { %723 = vmatprep.mubr.f32.mxu0 %v488_v40  ;;  %977 = vmatprep.mubr.f32.mxu1 %v488_v40  ;;  %v2352_v40 = vrot.slane %v1414_v37, %v1418_v36 }
  0x9d   : > { %724 = vmatmul.mubr.f32.gmra.mxu0 %v487_v0  ;;  %978 = vmatmul.mubr.f32.gmra.mxu1 %v487_v0  ;;  %v2354_v0 = vrot.slane %v1414_v37, %v1426_v38 }
  0x9e   : > { %729 = vmatprep.mubr.f32.mxu0 %v490_v41  ;;  %982 = vmatprep.mubr.f32.mxu1 %v490_v41  ;;  %v2356_v41 = vrot.slane %v1414_v37, %v1422_v39 }
  0xa1   : > { %730 = vmatmul.mubr.f32.gmra.mxu0 %v489_v42  ;;  %983 = vmatmul.mubr.f32.gmra.mxu1 %v489_v42 }
  0xa2   : > { %735 = vmatprep.mubr.f32.mxu0 %v492_v43  ;;  %987 = vmatprep.mubr.f32.mxu1 %v492_v43 }
  0xa5   : > { %736 = vmatmul.mubr.f32.gmra.mxu0 %v491_v44  ;;  %988 = vmatmul.mubr.f32.gmra.mxu1 %v491_v44 }
  0xa6   : > { %741 = vmatprep.mubr.f32.mxu0 %v494_v45  ;;  %992 = vmatprep.mubr.f32.mxu1 %v494_v45 }
  0xa9   : > { %742 = vmatmul.mubr.f32.gmra.mxu0 %v493_v46  ;;  %993 = vmatmul.mubr.f32.gmra.mxu1 %v493_v46 }
  0xaa   : > { %747 = vmatprep.mubr.f32.mxu0 %v496_v47  ;;  %997 = vmatprep.mubr.f32.mxu1 %v496_v47 }
  0xad   : > { %748 = vmatmul.mubr.f32.gmra.mxu0 %v495_v48  ;;  %998 = vmatmul.mubr.f32.gmra.mxu1 %v495_v48 }
  0xae   : > { %753 = vmatprep.mubr.f32.mxu0 %v498_v49  ;;  %1002 = vmatprep.mubr.f32.mxu1 %v498_v49 }
  0xb1   : > { %754 = vmatmul.mubr.f32.gmra.mxu0 %v497_v50  ;;  %1003 = vmatmul.mubr.f32.gmra.mxu1 %v497_v50 }
  0xb2   : > { %759 = vmatprep.mubr.f32.mxu0 %v500_v51  ;;  %1007 = vmatprep.mubr.f32.mxu1 %v500_v51 }
  0xb5   : > { %760 = vmatmul.mubr.f32.gmra.mxu0 %v499_v52  ;;  %1008 = vmatmul.mubr.f32.gmra.mxu1 %v499_v52 }
  0xb6   : > { %765 = vmatprep.mubr.f32.mxu0 %v502_v53  ;;  %1012 = vmatprep.mubr.f32.mxu1 %v502_v53 }
  0xb9   : > { %766 = vmatmul.mubr.f32.gmra.mxu0 %v501_v54  ;;  %1013 = vmatmul.mubr.f32.gmra.mxu1 %v501_v54 }
  0xba   : > { %771 = vmatprep.mubr.f32.mxu0 %v504_v55  ;;  %1017 = vmatprep.mubr.f32.mxu1 %v504_v55 }
  0xbd   : > { %772 = vmatmul.mubr.f32.gmra.mxu0 %v503_v56  ;;  %1018 = vmatmul.mubr.f32.gmra.mxu1 %v503_v56 }
  0xbe   : > { %777 = vmatprep.mubr.f32.mxu0 %v506_v57  ;;  %1022 = vmatprep.mubr.f32.mxu1 %v506_v57 }
  0xc1   : > { %778 = vmatmul.mubr.f32.gmra.mxu0 %v505_v58  ;;  %1023 = vmatmul.mubr.f32.gmra.mxu1 %v505_v58 }
  0xc2   : > { %783 = vmatprep.mubr.f32.mxu0 %v508_v59  ;;  %1027 = vmatprep.mubr.f32.mxu1 %v508_v59 }
  0xc5   : > { %784 = vmatmul.mubr.f32.gmra.mxu0 %v507_v60  ;;  %1028 = vmatmul.mubr.f32.gmra.mxu1 %v507_v60 }
  0xc6   : > { %789 = vmatprep.mubr.f32.mxu0 %v510_v61  ;;  %1032 = vmatprep.mubr.f32.mxu1 %v510_v61 }
  0xc9   : > { %790 = vmatmul.mubr.f32.gmra.mxu0 %v509_v62  ;;  %1033 = vmatmul.mubr.f32.gmra.mxu1 %v509_v62 }
  0xca   : > { %795 = vmatprep.mubr.f32.mxu0 %v512_v63  ;;  %1037 = vmatprep.mubr.f32.mxu1 %v512_v63 }
  0xcd   : > { %796 = vmatmul.mubr.f32.gmra.mxu0 %v511_v1  ;;  %1038 = vmatmul.mubr.f32.gmra.mxu1 %v511_v1 }
  0xce   : > { %801 = vmatprep.mubr.f32.mxu0 %v514_v2  ;;  %1042 = vmatprep.mubr.f32.mxu1 %v514_v2 }
  0xd1   : > { %802 = vmatmul.mubr.f32.gmra.mxu0 %v513_v3  ;;  %1043 = vmatmul.mubr.f32.gmra.mxu1 %v513_v3 }
  0xd2   : > { %807 = vmatprep.mubr.f32.mxu0 %v516_v4  ;;  %1047 = vmatprep.mubr.f32.mxu1 %v516_v4 }
  0xd5   : > { %808 = vmatmul.mubr.f32.gmra.mxu0 %v515_v5  ;;  %1048 = vmatmul.mubr.f32.gmra.mxu1 %v515_v5 }
  0xd6   : > { %813 = vmatprep.mubr.f32.mxu0 %v518_v6  ;;  %1052 = vmatprep.mubr.f32.mxu1 %v518_v6 }
  0xd9   : > { %814 = vmatmul.mubr.f32.gmra.mxu0 %v517_v7  ;;  %1053 = vmatmul.mubr.f32.gmra.mxu1 %v517_v7 }
  0xda   : > { %819 = vmatprep.mubr.f32.mxu0 %v520_v8  ;;  %1057 = vmatprep.mubr.f32.mxu1 %v520_v8 }
  0xdd   : > { %820 = vmatmul.mubr.f32.gmra.mxu0 %v519_v9  ;;  %1058 = vmatmul.mubr.f32.gmra.mxu1 %v519_v9 }
  0xde   : > { %825 = vmatprep.mubr.f32.mxu0 %v522_v10  ;;  %1062 = vmatprep.mubr.f32.mxu1 %v522_v10 }
  0xe1   : > { %826 = vmatmul.mubr.f32.gmra.mxu0 %v521_v11  ;;  %1063 = vmatmul.mubr.f32.gmra.mxu1 %v521_v11 }
  0xe2   : > { %831 = vmatprep.mubr.f32.mxu0 %v524_v12  ;;  %1067 = vmatprep.mubr.f32.mxu1 %v524_v12 }
  0xe5   : > { %832 = vmatmul.mubr.f32.gmra.mxu0 %v523_v13  ;;  %1068 = vmatmul.mubr.f32.gmra.mxu1 %v523_v13 }
  0xe6   : > { %837 = vmatprep.mubr.f32.mxu0 %v526_v14  ;;  %1072 = vmatprep.mubr.f32.mxu1 %v526_v14 }
  0xe9   : > { %838 = vmatmul.mubr.f32.gmra.mxu0 %v525_v15  ;;  %1073 = vmatmul.mubr.f32.gmra.mxu1 %v525_v15 }
  0xea   : > { %843 = vmatprep.mubr.f32.mxu0 %v528_v16  ;;  %1077 = vmatprep.mubr.f32.mxu1 %v528_v16 }
  0xed   : > { %844 = vmatmul.mubr.f32.gmra.mxu0 %v527_v17  ;;  %1078 = vmatmul.mubr.f32.gmra.mxu1 %v527_v17 }
  0xee   : > { %849 = vmatprep.mubr.f32.mxu0 %v530_v18  ;;  %1082 = vmatprep.mubr.f32.mxu1 %v530_v18 }
  0xf1   : > { %850 = vmatmul.mubr.f32.gmra.mxu0 %v529_v19  ;;  %1083 = vmatmul.mubr.f32.gmra.mxu1 %v529_v19 }
  0xf2   : > { %855 = vmatprep.mubr.f32.mxu0 %v532_v20  ;;  %1087 = vmatprep.mubr.f32.mxu1 %v532_v20 }
  0xf5   : > { %856 = vmatmul.mubr.f32.gmra.mxu0 %v531_v21  ;;  %1088 = vmatmul.mubr.f32.gmra.mxu1 %v531_v21 }
  0xf6   : > { %861 = vmatprep.mubr.f32.mxu0 %v534_v22  ;;  %1092 = vmatprep.mubr.f32.mxu1 %v534_v22 }
  0xf9   : > { %862 = vmatmul.mubr.f32.gmra.mxu0 %v533_v23  ;;  %1093 = vmatmul.mubr.f32.gmra.mxu1 %v533_v23 }
  0xfa   : > { %867 = vmatprep.mubr.f32.mxu0 %v536_v24  ;;  %1097 = vmatprep.mubr.f32.mxu1 %v536_v24 }
  0xfd   : > { %868 = vmatmul.mubr.f32.gmra.mxu0 %v535_v25  ;;  %1098 = vmatmul.mubr.f32.gmra.mxu1 %v535_v25 }
  0xfe   : > { %873 = vmatprep.mubr.f32.mxu0 %v538_v26  ;;  %1102 = vmatprep.mubr.f32.mxu1 %v538_v26 }
 0x101   : > { %874 = vmatmul.mubr.f32.gmra.mxu0 %v537_v27  ;;  %1103 = vmatmul.mubr.f32.gmra.mxu1 %v537_v27 }
 0x102   : > { %879 = vmatprep.mubr.f32.mxu0 %v540_v28  ;;  %1107 = vmatprep.mubr.f32.mxu1 %v540_v28 }
 0x105   : > { %880 = vmatmul.mubr.f32.gmra.mxu0 %v539_v29  ;;  %1108 = vmatmul.mubr.f32.gmra.mxu1 %v539_v29 }
 0x106   : > { %885 = vmatprep.mubr.f32.mxu0 %v542_v30  ;;  %1112 = vmatprep.mubr.f32.mxu1 %v542_v30 }
 0x109   : > { %886 = vmatmul.mubr.f32.gmra.mxu0 %v541_v31  ;;  %1113 = vmatmul.mubr.f32.gmra.mxu1 %v541_v31 }
 0x10a   : > { %891 = vmatprep.mubr.f32.mxu0 %v544_v32  ;;  %1117 = vmatprep.mubr.f32.mxu1 %v544_v32 }
 0x10d   : > { %892 = vmatmul.mubr.f32.gmra.mxu0 %v543_v33  ;;  %1118 = vmatmul.mubr.f32.gmra.mxu1 %v543_v33 }
 0x151   : > { %v707_v42 = vpop.f32.mrf.mxu0  ;;  %v964_v44 = vpop.f32.mrf.mxu1 }
 0x152   : > { %v1431_v43 = vadd.f32 %v2352_v40, %v707_v42  ;;  %v1433_v45 = vadd.f32 %v2354_v0, %v964_v44 }
 0x153   : > { %v709_v46 = vpop.f32.mrf.mxu0  ;;  %v966_v48 = vpop.f32.mrf.mxu1 }
 0x154   : > { %1527 = vst [vmem:[%s2362_s27] sm:$0xff] %v1431_v43  ;;  %v1432_v47 = vadd.f32 %v2356_v41, %v709_v46  ;;  %1529 = vst [vmem:[%s2362_s27 + $0x10] sm:$0xff] %v1433_v45 }
 0x155   : > { %v713_v49 = vpop.f32.mrf.mxu0  ;;  %v969_v51 = vpop.f32.mrf.mxu1 }
 0x156   : > { %1528 = vst [vmem:[%s2362_s27 + $0x8] sm:$0xff] %v1432_v47  ;;  %v1434_v50 = vadd.f32 %v2352_v40, %v713_v49  ;;  %v1436_v52 = vadd.f32 %v2354_v0, %v969_v51 }
 0x157   : > { %v715_v53 = vpop.f32.mrf.mxu0  ;;  %v971_v55 = vpop.f32.mrf.mxu1 }
 0x158   : > { %1530 = vst [vmem:[%s2362_s27 + $0x18] sm:$0xff] %v1434_v50  ;;  %v1435_v54 = vadd.f32 %v2356_v41, %v715_v53  ;;  %1532 = vst [vmem:[%s2362_s27 + $0x28] sm:$0xff] %v1436_v52 }
 0x159   : > { %v719_v56 = vpop.f32.mrf.mxu0  ;;  %v974_v58 = vpop.f32.mrf.mxu1 }
 0x15a   : > { %1531 = vst [vmem:[%s2362_s27 + $0x20] sm:$0xff] %v1435_v54  ;;  %v1437_v57 = vadd.f32 %v2352_v40, %v719_v56  ;;  %v1439_v59 = vadd.f32 %v2354_v0, %v974_v58 }
 0x15b   : > { %v721_v60 = vpop.f32.mrf.mxu0  ;;  %v976_v62 = vpop.f32.mrf.mxu1 }
 0x15c   : > { %1533 = vst [vmem:[%s2362_s27 + $0x30] sm:$0xff] %v1437_v57  ;;  %v1438_v61 = vadd.f32 %v2356_v41, %v721_v60  ;;  %1535 = vst [vmem:[%s2362_s27 + $0x40] sm:$0xff] %v1439_v59 }
 0x15d   : > { %v725_v63 = vpop.f32.mrf.mxu0  ;;  %v979_v2 = vpop.f32.mrf.mxu1 }
 0x15e   : > { %1534 = vst [vmem:[%s2362_s27 + $0x38] sm:$0xff] %v1438_v61  ;;  %v1440_v1 = vadd.f32 %v2352_v40, %v725_v63  ;;  %v1442_v3 = vadd.f32 %v2354_v0, %v979_v2 }
 0x15f   : > { %v727_v4 = vpop.f32.mrf.mxu0  ;;  %v981_v6 = vpop.f32.mrf.mxu1 }
 0x160   : > { %1536 = vst [vmem:[%s2362_s27 + $0x48] sm:$0xff] %v1440_v1  ;;  %v1441_v5 = vadd.f32 %v2356_v41, %v727_v4  ;;  %1538 = vst [vmem:[%s2362_s27 + $0x58] sm:$0xff] %v1442_v3 }
 0x161   : > { %v731_v7 = vpop.f32.mrf.mxu0  ;;  %v984_v9 = vpop.f32.mrf.mxu1 }
 0x162   : > { %1537 = vst [vmem:[%s2362_s27 + $0x50] sm:$0xff] %v1441_v5  ;;  %v1443_v8 = vadd.f32 %v2352_v40, %v731_v7  ;;  %v1445_v10 = vadd.f32 %v2354_v0, %v984_v9 }
 0x163   : > { %v733_v11 = vpop.f32.mrf.mxu0  ;;  %v986_v13 = vpop.f32.mrf.mxu1 }
 0x164   : > { %1539 = vst [vmem:[%s2362_s27 + $0x60] sm:$0xff] %v1443_v8  ;;  %v1444_v12 = vadd.f32 %v2356_v41, %v733_v11  ;;  %1541 = vst [vmem:[%s2362_s27 + $0x70] sm:$0xff] %v1445_v10 }
 0x165   : > { %v737_v14 = vpop.f32.mrf.mxu0  ;;  %v989_v16 = vpop.f32.mrf.mxu1 }
 0x166   : > { %1540 = vst [vmem:[%s2362_s27 + $0x68] sm:$0xff] %v1444_v12  ;;  %v1446_v15 = vadd.f32 %v2352_v40, %v737_v14  ;;  %v1448_v17 = vadd.f32 %v2354_v0, %v989_v16 }
 0x167   : > { %v739_v18 = vpop.f32.mrf.mxu0  ;;  %v991_v20 = vpop.f32.mrf.mxu1 }
 0x168   : > { %1542 = vst [vmem:[%s2362_s27 + $0x78] sm:$0xff] %v1446_v15  ;;  %v1447_v19 = vadd.f32 %v2356_v41, %v739_v18  ;;  %1544 = vst [vmem:[%s2362_s27 + $0x88] sm:$0xff] %v1448_v17 }
 0x169   : > { %v743_v21 = vpop.f32.mrf.mxu0  ;;  %v994_v23 = vpop.f32.mrf.mxu1 }
 0x16a   : > { %1543 = vst [vmem:[%s2362_s27 + $0x80] sm:$0xff] %v1447_v19  ;;  %v1449_v22 = vadd.f32 %v2352_v40, %v743_v21  ;;  %v1451_v24 = vadd.f32 %v2354_v0, %v994_v23 }
 0x16b   : > { %v745_v25 = vpop.f32.mrf.mxu0  ;;  %v996_v27 = vpop.f32.mrf.mxu1 }
 0x16c   : > { %1545 = vst [vmem:[%s2362_s27 + $0x90] sm:$0xff] %v1449_v22  ;;  %v1450_v26 = vadd.f32 %v2356_v41, %v745_v25  ;;  %1547 = vst [vmem:[%s2362_s27 + $0xa0] sm:$0xff] %v1451_v24 }
 0x16d   : > { %v749_v28 = vpop.f32.mrf.mxu0  ;;  %v999_v30 = vpop.f32.mrf.mxu1 }
 0x16e   : > { %1546 = vst [vmem:[%s2362_s27 + $0x98] sm:$0xff] %v1450_v26  ;;  %v1452_v29 = vadd.f32 %v2352_v40, %v749_v28  ;;  %v1454_v31 = vadd.f32 %v2354_v0, %v999_v30 }
 0x16f   : > { %v751_v32 = vpop.f32.mrf.mxu0  ;;  %v1001_v34 = vpop.f32.mrf.mxu1 }
 0x170   : > { %1548 = vst [vmem:[%s2362_s27 + $0xa8] sm:$0xff] %v1452_v29  ;;  %v1453_v33 = vadd.f32 %v2356_v41, %v751_v32  ;;  %1550 = vst [vmem:[%s2362_s27 + $0xb8] sm:$0xff] %v1454_v31 }
 0x171   : > { %v755_v35 = vpop.f32.mrf.mxu0  ;;  %v1004_v37 = vpop.f32.mrf.mxu1 }
 0x172   : > { %1549 = vst [vmem:[%s2362_s27 + $0xb0] sm:$0xff] %v1453_v33  ;;  %v1455_v36 = vadd.f32 %v2352_v40, %v755_v35  ;;  %v1457_v38 = vadd.f32 %v2354_v0, %v1004_v37 }
 0x173   : > { %v757_v39 = vpop.f32.mrf.mxu0  ;;  %v1006_v43 = vpop.f32.mrf.mxu1 }
 0x174   : > { %1551 = vst [vmem:[%s2362_s27 + $0xc0] sm:$0xff] %v1455_v36  ;;  %v1456_v42 = vadd.f32 %v2356_v41, %v757_v39  ;;  %1553 = vst [vmem:[%s2362_s27 + $0xd0] sm:$0xff] %v1457_v38 }
 0x175   : > { %v761_v44 = vpop.f32.mrf.mxu0  ;;  %v1009_v46 = vpop.f32.mrf.mxu1 }
 0x176   : > { %1552 = vst [vmem:[%s2362_s27 + $0xc8] sm:$0xff] %v1456_v42  ;;  %v1458_v45 = vadd.f32 %v2352_v40, %v761_v44  ;;  %v1460_v47 = vadd.f32 %v2354_v0, %v1009_v46 }
 0x177   : > { %v763_v48 = vpop.f32.mrf.mxu0  ;;  %v1011_v50 = vpop.f32.mrf.mxu1 }
 0x178   : > { %1554 = vst [vmem:[%s2362_s27 + $0xd8] sm:$0xff] %v1458_v45  ;;  %v1459_v49 = vadd.f32 %v2356_v41, %v763_v48  ;;  %1556 = vst [vmem:[%s2362_s27 + $0xe8] sm:$0xff] %v1460_v47 }
 0x179   : > { %v767_v51 = vpop.f32.mrf.mxu0  ;;  %v1014_v53 = vpop.f32.mrf.mxu1 }
 0x17a   : > { %1555 = vst [vmem:[%s2362_s27 + $0xe0] sm:$0xff] %v1459_v49  ;;  %v1461_v52 = vadd.f32 %v2352_v40, %v767_v51  ;;  %v1463_v54 = vadd.f32 %v2354_v0, %v1014_v53 }
 0x17b   : > { %v769_v55 = vpop.f32.mrf.mxu0  ;;  %v1016_v57 = vpop.f32.mrf.mxu1 }
 0x17c   : > { %1557 = vst [vmem:[%s2362_s27 + $0xf0] sm:$0xff] %v1461_v52  ;;  %v1462_v56 = vadd.f32 %v2356_v41, %v769_v55  ;;  %1559 = vst [vmem:[%s2362_s27 + $0x100] sm:$0xff] %v1463_v54 }
 0x17d   : > { %v773_v58 = vpop.f32.mrf.mxu0  ;;  %v1019_v60 = vpop.f32.mrf.mxu1 }
 0x17e   : > { %1558 = vst [vmem:[%s2362_s27 + $0xf8] sm:$0xff] %v1462_v56  ;;  %v1464_v59 = vadd.f32 %v2352_v40, %v773_v58  ;;  %v1466_v61 = vadd.f32 %v2354_v0, %v1019_v60 }
 0x17f   : > { %v775_v62 = vpop.f32.mrf.mxu0  ;;  %v1021_v1 = vpop.f32.mrf.mxu1 }
 0x180   : > { %1560 = vst [vmem:[%s2362_s27 + $0x108] sm:$0xff] %v1464_v59  ;;  %v1465_v63 = vadd.f32 %v2356_v41, %v775_v62  ;;  %1562 = vst [vmem:[%s2362_s27 + $0x118] sm:$0xff] %v1466_v61 }
 0x181   : > { %v779_v2 = vpop.f32.mrf.mxu0  ;;  %v1024_v4 = vpop.f32.mrf.mxu1 }
 0x182   : > { %1561 = vst [vmem:[%s2362_s27 + $0x110] sm:$0xff] %v1465_v63  ;;  %v1467_v3 = vadd.f32 %v2352_v40, %v779_v2  ;;  %v1469_v5 = vadd.f32 %v2354_v0, %v1024_v4 }
 0x183   : > { %v781_v6 = vpop.f32.mrf.mxu0  ;;  %v1026_v8 = vpop.f32.mrf.mxu1 }
 0x184   : > { %1563 = vst [vmem:[%s2362_s27 + $0x120] sm:$0xff] %v1467_v3  ;;  %v1468_v7 = vadd.f32 %v2356_v41, %v781_v6  ;;  %1565 = vst [vmem:[%s2362_s27 + $0x130] sm:$0xff] %v1469_v5 }
 0x185   : > { %v785_v9 = vpop.f32.mrf.mxu0  ;;  %v1029_v11 = vpop.f32.mrf.mxu1 }
 0x186   : > { %1564 = vst [vmem:[%s2362_s27 + $0x128] sm:$0xff] %v1468_v7  ;;  %v1470_v10 = vadd.f32 %v2352_v40, %v785_v9  ;;  %v1472_v12 = vadd.f32 %v2354_v0, %v1029_v11 }
 0x187   : > { %v787_v13 = vpop.f32.mrf.mxu0  ;;  %v1031_v15 = vpop.f32.mrf.mxu1 }
 0x188   : > { %1566 = vst [vmem:[%s2362_s27 + $0x138] sm:$0xff] %v1470_v10  ;;  %v1471_v14 = vadd.f32 %v2356_v41, %v787_v13  ;;  %1568 = vst [vmem:[%s2362_s27 + $0x148] sm:$0xff] %v1472_v12 }
 0x189   : > { %v791_v16 = vpop.f32.mrf.mxu0  ;;  %v1034_v18 = vpop.f32.mrf.mxu1 }
 0x18a   : > { %1567 = vst [vmem:[%s2362_s27 + $0x140] sm:$0xff] %v1471_v14  ;;  %v1473_v17 = vadd.f32 %v2352_v40, %v791_v16  ;;  %v1475_v19 = vadd.f32 %v2354_v0, %v1034_v18 }
 0x18b   : > { %v793_v20 = vpop.f32.mrf.mxu0  ;;  %v1036_v22 = vpop.f32.mrf.mxu1 }
 0x18c   : > { %1569 = vst [vmem:[%s2362_s27 + $0x150] sm:$0xff] %v1473_v17  ;;  %v1474_v21 = vadd.f32 %v2356_v41, %v793_v20  ;;  %1571 = vst [vmem:[%s2362_s27 + $0x160] sm:$0xff] %v1475_v19 }
 0x18d   : > { %v797_v23 = vpop.f32.mrf.mxu0  ;;  %v1039_v25 = vpop.f32.mrf.mxu1 }
 0x18e   : > { %1570 = vst [vmem:[%s2362_s27 + $0x158] sm:$0xff] %v1474_v21  ;;  %v1476_v24 = vadd.f32 %v2352_v40, %v797_v23  ;;  %v1478_v26 = vadd.f32 %v2354_v0, %v1039_v25 }
 0x18f   : > { %v799_v27 = vpop.f32.mrf.mxu0  ;;  %v1041_v29 = vpop.f32.mrf.mxu1 }
 0x190   : > { %1572 = vst [vmem:[%s2362_s27 + $0x168] sm:$0xff] %v1476_v24  ;;  %v1477_v28 = vadd.f32 %v2356_v41, %v799_v27  ;;  %1574 = vst [vmem:[%s2362_s27 + $0x178] sm:$0xff] %v1478_v26 }
 0x191   : > { %v803_v30 = vpop.f32.mrf.mxu0  ;;  %v1044_v32 = vpop.f32.mrf.mxu1 }
 0x192   : > { %1573 = vst [vmem:[%s2362_s27 + $0x170] sm:$0xff] %v1477_v28  ;;  %v1479_v31 = vadd.f32 %v2352_v40, %v803_v30  ;;  %v1481_v33 = vadd.f32 %v2354_v0, %v1044_v32 }
 0x193   : > { %v805_v34 = vpop.f32.mrf.mxu0  ;;  %v1046_v36 = vpop.f32.mrf.mxu1 }
 0x194   : > { %1575 = vst [vmem:[%s2362_s27 + $0x180] sm:$0xff] %v1479_v31  ;;  %v1480_v35 = vadd.f32 %v2356_v41, %v805_v34  ;;  %1577 = vst [vmem:[%s2362_s27 + $0x190] sm:$0xff] %v1481_v33 }
 0x195   : > { %v809_v37 = vpop.f32.mrf.mxu0  ;;  %v1049_v39 = vpop.f32.mrf.mxu1 }
 0x196   : > { %1576 = vst [vmem:[%s2362_s27 + $0x188] sm:$0xff] %v1480_v35  ;;  %v1482_v38 = vadd.f32 %v2352_v40, %v809_v37  ;;  %v1484_v42 = vadd.f32 %v2354_v0, %v1049_v39 }
 0x197   : > { %v811_v43 = vpop.f32.mrf.mxu0  ;;  %v1051_v45 = vpop.f32.mrf.mxu1 }
 0x198   : > { %1578 = vst [vmem:[%s2362_s27 + $0x198] sm:$0xff] %v1482_v38  ;;  %v1483_v44 = vadd.f32 %v2356_v41, %v811_v43  ;;  %1580 = vst [vmem:[%s2362_s27 + $0x1a8] sm:$0xff] %v1484_v42 }
 0x199   : > { %v815_v46 = vpop.f32.mrf.mxu0  ;;  %v1054_v48 = vpop.f32.mrf.mxu1 }
 0x19a   : > { %1579 = vst [vmem:[%s2362_s27 + $0x1a0] sm:$0xff] %v1483_v44  ;;  %v1485_v47 = vadd.f32 %v2352_v40, %v815_v46  ;;  %v1487_v49 = vadd.f32 %v2354_v0, %v1054_v48 }
 0x19b   : > { %v817_v50 = vpop.f32.mrf.mxu0  ;;  %v1056_v52 = vpop.f32.mrf.mxu1 }
 0x19c   : > { %1581 = vst [vmem:[%s2362_s27 + $0x1b0] sm:$0xff] %v1485_v47  ;;  %v1486_v51 = vadd.f32 %v2356_v41, %v817_v50  ;;  %1583 = vst [vmem:[%s2362_s27 + $0x1c0] sm:$0xff] %v1487_v49 }
 0x19d   : > { %v821_v53 = vpop.f32.mrf.mxu0  ;;  %v1059_v55 = vpop.f32.mrf.mxu1 }
 0x19e   : > { %1582 = vst [vmem:[%s2362_s27 + $0x1b8] sm:$0xff] %v1486_v51  ;;  %v1488_v54 = vadd.f32 %v2352_v40, %v821_v53  ;;  %v1490_v56 = vadd.f32 %v2354_v0, %v1059_v55 }
 0x19f   : > { %v823_v57 = vpop.f32.mrf.mxu0  ;;  %v1061_v59 = vpop.f32.mrf.mxu1 }
 0x1a0   : > { %1584 = vst [vmem:[%s2362_s27 + $0x1c8] sm:$0xff] %v1488_v54  ;;  %v1489_v58 = vadd.f32 %v2356_v41, %v823_v57  ;;  %1586 = vst [vmem:[%s2362_s27 + $0x1d8] sm:$0xff] %v1490_v56 }
 0x1a1   : > { %v827_v60 = vpop.f32.mrf.mxu0  ;;  %v1064_v62 = vpop.f32.mrf.mxu1 }
 0x1a2   : > { %1585 = vst [vmem:[%s2362_s27 + $0x1d0] sm:$0xff] %v1489_v58  ;;  %v1491_v61 = vadd.f32 %v2352_v40, %v827_v60  ;;  %v1493_v63 = vadd.f32 %v2354_v0, %v1064_v62 }
 0x1a3   : > { %v829_v1 = vpop.f32.mrf.mxu0  ;;  %v1066_v3 = vpop.f32.mrf.mxu1 }
 0x1a4   : > { %1587 = vst [vmem:[%s2362_s27 + $0x1e0] sm:$0xff] %v1491_v61  ;;  %v1492_v2 = vadd.f32 %v2356_v41, %v829_v1  ;;  %1589 = vst [vmem:[%s2362_s27 + $0x1f0] sm:$0xff] %v1493_v63 }
 0x1a5   : > { %v833_v4 = vpop.f32.mrf.mxu0  ;;  %v1069_v6 = vpop.f32.mrf.mxu1 }
 0x1a6   : > { %1588 = vst [vmem:[%s2362_s27 + $0x1e8] sm:$0xff] %v1492_v2  ;;  %v1494_v5 = vadd.f32 %v2352_v40, %v833_v4  ;;  %v1496_v7 = vadd.f32 %v2354_v0, %v1069_v6 }
 0x1a7   : > { %v835_v8 = vpop.f32.mrf.mxu0  ;;  %v1071_v10 = vpop.f32.mrf.mxu1 }
 0x1a8   : > { %1590 = vst [vmem:[%s2362_s27 + $0x1f8] sm:$0xff] %v1494_v5  ;;  %v1495_v9 = vadd.f32 %v2356_v41, %v835_v8  ;;  %1592 = vst [vmem:[%s2362_s27 + $0x208] sm:$0xff] %v1496_v7 }
 0x1a9   : > { %v839_v11 = vpop.f32.mrf.mxu0  ;;  %v1074_v13 = vpop.f32.mrf.mxu1 }
 0x1aa   : > { %1591 = vst [vmem:[%s2362_s27 + $0x200] sm:$0xff] %v1495_v9  ;;  %v1497_v12 = vadd.f32 %v2352_v40, %v839_v11  ;;  %v1499_v14 = vadd.f32 %v2354_v0, %v1074_v13 }
 0x1ab   : > { %v841_v15 = vpop.f32.mrf.mxu0  ;;  %v1076_v17 = vpop.f32.mrf.mxu1 }
 0x1ac   : > { %1593 = vst [vmem:[%s2362_s27 + $0x210] sm:$0xff] %v1497_v12  ;;  %v1498_v16 = vadd.f32 %v2356_v41, %v841_v15  ;;  %1595 = vst [vmem:[%s2362_s27 + $0x220] sm:$0xff] %v1499_v14 }
 0x1ad   : > { %v845_v18 = vpop.f32.mrf.mxu0  ;;  %v1079_v20 = vpop.f32.mrf.mxu1 }
 0x1ae   : > { %1594 = vst [vmem:[%s2362_s27 + $0x218] sm:$0xff] %v1498_v16  ;;  %v1500_v19 = vadd.f32 %v2352_v40, %v845_v18  ;;  %v1502_v21 = vadd.f32 %v2354_v0, %v1079_v20 }
 0x1af   : > { %v847_v22 = vpop.f32.mrf.mxu0  ;;  %v1081_v24 = vpop.f32.mrf.mxu1 }
 0x1b0   : > { %1596 = vst [vmem:[%s2362_s27 + $0x228] sm:$0xff] %v1500_v19  ;;  %v1501_v23 = vadd.f32 %v2356_v41, %v847_v22  ;;  %1598 = vst [vmem:[%s2362_s27 + $0x238] sm:$0xff] %v1502_v21 }
 0x1b1   : > { %v851_v25 = vpop.f32.mrf.mxu0  ;;  %v1084_v27 = vpop.f32.mrf.mxu1 }
 0x1b2   : > { %1597 = vst [vmem:[%s2362_s27 + $0x230] sm:$0xff] %v1501_v23  ;;  %v1503_v26 = vadd.f32 %v2352_v40, %v851_v25  ;;  %v1505_v28 = vadd.f32 %v2354_v0, %v1084_v27 }
 0x1b3   : > { %v853_v29 = vpop.f32.mrf.mxu0  ;;  %v1086_v31 = vpop.f32.mrf.mxu1 }
 0x1b4   : > { %1599 = vst [vmem:[%s2362_s27 + $0x240] sm:$0xff] %v1503_v26  ;;  %v1504_v30 = vadd.f32 %v2356_v41, %v853_v29  ;;  %1601 = vst [vmem:[%s2362_s27 + $0x250] sm:$0xff] %v1505_v28 }
 0x1b5   : > { %v857_v32 = vpop.f32.mrf.mxu0  ;;  %v1089_v34 = vpop.f32.mrf.mxu1 }
 0x1b6   : > { %1600 = vst [vmem:[%s2362_s27 + $0x248] sm:$0xff] %v1504_v30  ;;  %v1506_v33 = vadd.f32 %v2352_v40, %v857_v32  ;;  %v1508_v35 = vadd.f32 %v2354_v0, %v1089_v34 }
 0x1b7   : > { %v859_v36 = vpop.f32.mrf.mxu0  ;;  %v1091_v38 = vpop.f32.mrf.mxu1 }
 0x1b8   : > { %1602 = vst [vmem:[%s2362_s27 + $0x258] sm:$0xff] %v1506_v33  ;;  %v1507_v37 = vadd.f32 %v2356_v41, %v859_v36  ;;  %1604 = vst [vmem:[%s2362_s27 + $0x268] sm:$0xff] %v1508_v35 }
 0x1b9   : > { %v863_v39 = vpop.f32.mrf.mxu0  ;;  %v1094_v43 = vpop.f32.mrf.mxu1 }
 0x1ba   : > { %1603 = vst [vmem:[%s2362_s27 + $0x260] sm:$0xff] %v1507_v37  ;;  %v1509_v42 = vadd.f32 %v2352_v40, %v863_v39  ;;  %v1511_v44 = vadd.f32 %v2354_v0, %v1094_v43 }
 0x1bb   : > { %v865_v45 = vpop.f32.mrf.mxu0  ;;  %v1096_v47 = vpop.f32.mrf.mxu1 }
 0x1bc   : > { %1605 = vst [vmem:[%s2362_s27 + $0x270] sm:$0xff] %v1509_v42  ;;  %v1510_v46 = vadd.f32 %v2356_v41, %v865_v45  ;;  %1607 = vst [vmem:[%s2362_s27 + $0x280] sm:$0xff] %v1511_v44 }
 0x1bd   : > { %v869_v48 = vpop.f32.mrf.mxu0  ;;  %v1099_v50 = vpop.f32.mrf.mxu1 }
 0x1be   : > { %1606 = vst [vmem:[%s2362_s27 + $0x278] sm:$0xff] %v1510_v46  ;;  %v1512_v49 = vadd.f32 %v2352_v40, %v869_v48  ;;  %v1514_v51 = vadd.f32 %v2354_v0, %v1099_v50 }
 0x1bf   : > { %v871_v52 = vpop.f32.mrf.mxu0  ;;  %v1101_v54 = vpop.f32.mrf.mxu1 }
 0x1c0   : > { %1608 = vst [vmem:[%s2362_s27 + $0x288] sm:$0xff] %v1512_v49  ;;  %v1513_v53 = vadd.f32 %v2356_v41, %v871_v52  ;;  %1610 = vst [vmem:[%s2362_s27 + $0x298] sm:$0xff] %v1514_v51 }
 0x1c1   : > { %v875_v55 = vpop.f32.mrf.mxu0  ;;  %v1104_v57 = vpop.f32.mrf.mxu1 }
 0x1c2   : > { %1609 = vst [vmem:[%s2362_s27 + $0x290] sm:$0xff] %v1513_v53  ;;  %v1515_v56 = vadd.f32 %v2352_v40, %v875_v55  ;;  %v1517_v58 = vadd.f32 %v2354_v0, %v1104_v57 }
 0x1c3   : > { %v877_v59 = vpop.f32.mrf.mxu0  ;;  %v1106_v61 = vpop.f32.mrf.mxu1 }
 0x1c4   : > { %1611 = vst [vmem:[%s2362_s27 + $0x2a0] sm:$0xff] %v1515_v56  ;;  %v1516_v60 = vadd.f32 %v2356_v41, %v877_v59  ;;  %1613 = vst [vmem:[%s2362_s27 + $0x2b0] sm:$0xff] %v1517_v58 }
 0x1c5   : > { %v881_v62 = vpop.f32.mrf.mxu0  ;;  %v1109_v1 = vpop.f32.mrf.mxu1 }
 0x1c6   : > { %1612 = vst [vmem:[%s2362_s27 + $0x2a8] sm:$0xff] %v1516_v60  ;;  %v1518_v63 = vadd.f32 %v2352_v40, %v881_v62  ;;  %v1520_v2 = vadd.f32 %v2354_v0, %v1109_v1 }
 0x1c7   : > { %v883_v3 = vpop.f32.mrf.mxu0  ;;  %v1111_v5 = vpop.f32.mrf.mxu1 }
 0x1c8   : > { %1614 = vst [vmem:[%s2362_s27 + $0x2b8] sm:$0xff] %v1518_v63  ;;  %v1519_v4 = vadd.f32 %v2356_v41, %v883_v3  ;;  %1616 = vst [vmem:[%s2362_s27 + $0x2c8] sm:$0xff] %v1520_v2 }
 0x1c9   : > { %v887_v6 = vpop.f32.mrf.mxu0  ;;  %v1114_v8 = vpop.f32.mrf.mxu1 }
 0x1ca   : > { %1615 = vst [vmem:[%s2362_s27 + $0x2c0] sm:$0xff] %v1519_v4  ;;  %v1521_v7 = vadd.f32 %v2352_v40, %v887_v6  ;;  %v1523_v9 = vadd.f32 %v2354_v0, %v1114_v8 }
 0x1cb   : > { %v889_v10 = vpop.f32.mrf.mxu0  ;;  %v1116_v12 = vpop.f32.mrf.mxu1 }
 0x1cc   : > { %1617 = vst [vmem:[%s2362_s27 + $0x2d0] sm:$0xff] %v1521_v7  ;;  %v1522_v11 = vadd.f32 %v2356_v41, %v889_v10  ;;  %1619 = vst [vmem:[%s2362_s27 + $0x2e0] sm:$0xff] %v1523_v9 }
 0x1cd   : > { %v893_v13 = vpop.f32.mrf.mxu0  ;;  %v1119_v15 = vpop.f32.mrf.mxu1 }
 0x1ce   : > { %1618 = vst [vmem:[%s2362_s27 + $0x2d8] sm:$0xff] %v1522_v11  ;;  %v1524_v14 = vadd.f32 %v2352_v40, %v893_v13  ;;  %v1526_v16 = vadd.f32 %v2354_v0, %v1119_v15 }
 0x1cf   : > { %v895_v17 = vpop.f32.mrf.mxu0  ;;  %v1121_v19 = vpop.f32.mrf.mxu1 }
 0x1d0   : > { %1620 = vst [vmem:[%s2362_s27 + $0x2e8] sm:$0xff] %v1524_v14  ;;  %v1525_v18 = vadd.f32 %v2356_v41, %v895_v17  ;;  %1622 = vst [vmem:[%s2362_s27 + $0x2f8] sm:$0xff] %v1526_v16 }
 0x1d2   : > { %1621 = vst [vmem:[%s2362_s27 + $0x2f0] sm:$0xff] %v1525_v18 }
 0x1d3   : > { %1968 = shalt.err (!%p1965_p6)
}
 0x1d4   : > { %s1969_s30 = scalar_lea.hbm %s2554_s6, 12288  ;;  %s1973_s5 = scalar_lea.hbm %s2612_s3, 24576 }
 0x1d5   : > { %p1970_p8 = scmp.ne.s32.totalorder %s2554_s6, %s1969_s30  ;;  %p1974_p11 = scmp.lt.s32.totalorder %s2554_s6, %s2612_s3 }
 0x1d6   : > { %p1975_p12 = scmp.lt.s32.totalorder %s1973_s5, %s1969_s30 }
 0x1d7   : > { %p1971_p5 = pnand %p1970_p8, %p2625_p10 }
 0x1d8   : > { %p1976_p13 = por %p1975_p12, %p1974_p11 }
 0x1d9   : > { %p1972_p9 = pneg %p1971_p5 }
 0x1db   : > { %p1977_p7 = pnand %p1976_p13, %p1972_p9 }
 0x1dd   : > { %1980 = shalt.err (!%p1977_p7)
}
 0x1de   : > { %s2051_s27 = smov 384   ;;  %s2052_s10 = smov 768  }
 0x1df   : > { %s2053_s15 = smov 24  }
 0x1e0   : > { %1794 = dma.vmem_to_hbm [thread:$0]  (%p2625_p10), %s2557_s19, 12288, %s2554_s6, %s1624_s4, %s2051_s27, %s2052_s10, %s2053_s15  }
 0x1e1 PF: > { %s1655_s28 = sand.u32 1, %s2019_s12   ;;  %p2626_p2 = scmp.ne.s32.totalorder %s2619_s26, 0 }
 0x1e2   : > { %p2627_p1 = scmp.ge.s32.totalorder %s2039_s17, 2  ;;  %s1656_s8 = scalar_lea.sflag [#allocation5], %s1655_s28 }
 0x1e4   : > { %p1808_p0 = pnand %p2627_p1, %p2626_p2 }
 0x1e6   : > { %p1809_p3 = pneg %p1808_p0 }
 0x1e8   : > { %2014 = dma.done.wait (%p1809_p3), %s1656_s8, 12288  }
 0x1e9   : > { %2016 = vsyncadd (%p1809_p3), %s1656_s8, 4294955008  ;;  %s20_s17 = sadd.s32 1, %s2039_s17   ;;  %s2628_s12 = smov %s2023_s13 }
 0x1ea   : > { %p17_p4 = scmp.ge.s32.totalorder %s20_s17, 4   ;;  %s2629_s13 = smov %s2027_s14 }
 0x1eb   : > { %s2630_s14 = smov %s2122_s24  ;;  %s2631_s15 = smov %s2035_s16 }
 0x1ec   : > { %s2632_s16 = smov %s2634_s18  ;;  %19 = sbr.rel (!%p17_p4) target bundleno = 7 (0x7), region = 102 }
 0x1f1   :  { %1661 = vsyncpa [#allocation4], 1 }
 0x1f2   :  { %1663 = vsyncpa [#allocation4 + $0x1], 1 }
 0x1f3   :  { %1664 = vsyncpa [#allocation7], 1 }
 0x1f4   :  { %1666 = vsyncpa [#allocation7 + $0x1], 1 }
 0x1f5   :  { %1667 = vsyncpa [#allocation5], 1 }
 0x1f6   :  { %1669 = vsyncpa [#allocation5 + $0x1], 1 }

</bundles_post_ra>
